<compile_context>
chip_gen: v6e
topology: v6e:2x2x1
jax: 0.10.0
libtpu: 0.0.40
codegen_flags: <defaults>
</compile_context>

<pallas_src>
import functools

import jax
import jax.numpy as jnp
from jax.experimental import pallas as pl
from jax.experimental.pallas import tpu as pltpu


def _numerator_kernel(x_ref, tgt_ref, out_ref, *, B, T, b_tile, t_tile):
    """out[b, t] = clamp(x[b, t, targets[b, t]], -30, 30); 0 for padded frames."""
    x = x_ref[...]        # (b_tile, t_tile, C), model dtype (f32 or bf16)
    tgt = tgt_ref[...]    # (b_tile, t_tile), int32
    C = x.shape[-1]

    # One-hot gather along the class axis.  The (1, 1, C) iota broadcasts in the
    # compare, so no full-tile int32 index cube is materialized.
    cls_idx = jax.lax.broadcasted_iota(jnp.int32, (1, 1, C), 2)
    mask = cls_idx == tgt[:, :, None]

    # Only the selected class survives the sum, so reducing in the input dtype
    # (even bf16) is exact; out-of-range targets select nothing and yield 0.
    per_bt = jnp.sum(jnp.where(mask, x, jnp.zeros((), x.dtype)), axis=2)

    # Clamp after the gather: identical to clamping the whole tile first, but
    # O(B*T) VPU ops instead of O(B*T*C).
    per_bt = jnp.clip(per_bt.astype(jnp.float32), -30.0, 30.0)

    # Mask padded tail frames so they contribute exactly 0 (ragged T / split B).
    if T % t_tile != 0:
        t_idx = pl.program_id(1) * t_tile + jax.lax.broadcasted_iota(
            jnp.int32, (1, t_tile), 1)
        per_bt = jnp.where(t_idx < T, per_bt, 0.0)
    if B % b_tile != 0:
        b_idx = pl.program_id(0) * b_tile + jax.lax.broadcasted_iota(
            jnp.int32, (b_tile, 1), 0)
        per_bt = jnp.where(b_idx < B, per_bt, 0.0)

    out_ref[...] = per_bt


def _choose_tiles(B, T, C, itemsize, tile_budget_bytes):
    """Largest (b_tile, t_tile) whose x tile fits the VMEM budget.

    Prefers the full batch with the biggest 128-multiple time tile; splits the
    batch (sublane-friendly multiples of 8) only if a single 128-frame tile of
    the full batch would not fit.
    """
    row_bytes = C * itemsize
    t_cap = (T // 128) * 128 if T >= 128 else T  # tail handled by masking

    b_tile = B
    max_t = (tile_budget_bytes // max(1, b_tile * row_bytes)) // 128 * 128

    if max_t < 128 and B > 1:
        b_fit = max(1, tile_budget_bytes // (128 * row_bytes))
        if B <= 8 or b_fit < 8:
            b_tile = min(B, 8)
        else:
            b_tile = min(B, (b_fit // 8) * 8)
        max_t = (tile_budget_bytes // max(1, b_tile * row_bytes)) // 128 * 128
        # TODO(synk): for pdf counts so large that even a (8, 128, C) tile
        # overflows the budget, also tile the class axis (offsetting the iota
        # by the C-block base index).

    t_tile = max(min(t_cap, max_t), min(t_cap, 128), 1)
    return b_tile, t_tile


def numerator_objf(x, targets, *, tile_budget_bytes=4 * 1024 * 1024,
                   vmem_limit_bytes=48 * 1024 * 1024):
    """Pallas implementation of NumeratorFunction.forward (returns a scalar)."""
    B, T, C = x.shape
    targets = targets.astype(jnp.int32)

    b_tile, t_tile = _choose_tiles(B, T, C, x.dtype.itemsize, tile_budget_bytes)
    grid = (pl.cdiv(B, b_tile), pl.cdiv(T, t_tile))

    kernel = functools.partial(
        _numerator_kernel, B=B, T=T, b_tile=b_tile, t_tile=t_tile)

    per_bt = pl.pallas_call(
        kernel,
        out_shape=jax.ShapeDtypeStruct((B, T), jnp.float32),
        grid_spec=pltpu.PrefetchScalarGridSpec(
            num_scalar_prefetch=0,
            grid=grid,
            in_specs=[
                pl.BlockSpec((b_tile, t_tile, C), lambda b, t: (b, t, 0)),
                pl.BlockSpec((b_tile, t_tile), lambda b, t: (b, t)),
            ],
            out_specs=pl.BlockSpec((b_tile, t_tile), lambda b, t: (b, t)),
        ),
        compiler_params=pltpu.CompilerParams(
            # Independent per-block partials: both axes parallel (megacore on v7x).
            dimension_semantics=("parallel", "parallel"),
            vmem_limit_bytes=vmem_limit_bytes,
        ),
    )(x, targets)

    # Final reduction of the tiny (B, T) partial array is done by XLA.
    return jnp.sum(per_bt)


@functools.partial(jax.jit, static_argnames=("avg",))
def chain_loss_forward(x, targets, den_objf=jnp.float32(0.0), avg=True):
    """Mirrors ChainLoss.forward:  loss = -(num_objf - den_objf) [/ (B*T)]."""
    B, T, _ = x.shape
    num_objf = numerator_objf(x, targets)
    loss = -(num_objf - den_objf)
    if avg:
        loss = loss / (B * T)
    return loss, None


if __name__ == "__main__":
    key = jax.random.PRNGKey(0)
    kx, kt = jax.random.split(key)

    # Small shapes: batch=2, T=320 (exercises a masked tail tile), 128 pdfs.
    B, T, C = 2, 320, 128
    x = jax.random.normal(kx, (B, T, C), dtype=jnp.float32) * 10.0
    targets = jax.random.randint(kt, (B, T), 0, C, dtype=jnp.int32)

    loss, _ = chain_loss_forward(x, targets, den_objf=jnp.float32(0.0), avg=True)
    loss = jax.block_until_ready(loss)

    # Cross-check the numerator path against plain JAX.
    ref_num = jnp.sum(
        jnp.take_along_axis(jnp.clip(x, -30.0, 30.0), targets[..., None], axis=2)
    )
    ref_loss = -(ref_num - 0.0) / (B * T)
    assert jnp.allclose(loss, ref_loss, rtol=1e-5, atol=1e-5), (loss, ref_loss)

    print("KERNEL_OK")
</pallas_src>

<mosaic_0001>
module attributes {stable_mosaic.version = 11 : i64} {
  func.func @_numerator_kernel(%arg0: i32, %arg1: i32, %arg2: memref<2x256x128xf32, #tpu.memory_space<vmem>>, %arg3: memref<2x256xi32, #tpu.memory_space<vmem>>, %arg4: memref<2x256xf32, #tpu.memory_space<vmem>>) attributes {dimension_semantics = [#tpu.dimension_semantics<parallel>, #tpu.dimension_semantics<parallel>], iteration_bounds = array<i64: 1, 2>, scalar_prefetch = 0 : i64, scratch_operands = 0 : i64, tpu.core_type = #tpu.core_type<tc>, window_params = [{transform_indices = @transform_0, window_bounds = array<i64: 2, 256, 128>}, {transform_indices = @transform_1, window_bounds = array<i64: 2, 256>}, {transform_indices = @transform_2, window_bounds = array<i64: 2, 256>}]} {
    %c0 = arith.constant 0 : index
    %c0_0 = arith.constant 0 : index
    %c0_1 = arith.constant 0 : index
    %0 = vector.load %arg2[%c0, %c0_0, %c0_1] : memref<2x256x128xf32, #tpu.memory_space<vmem>>, vector<2x256x128xf32>
    %c0_2 = arith.constant 0 : index
    %c0_3 = arith.constant 0 : index
    %1 = vector.load %arg3[%c0_2, %c0_3] : memref<2x256xi32, #tpu.memory_space<vmem>>, vector<2x256xi32>
    %2 = tpu.iota {dimensions = array<i32: 2>} : vector<1x1x128xi32>
    %3 = vector.shape_cast %1 : vector<2x256xi32> to vector<2x256x1xi32>
    %4 = vector.broadcast %2 : vector<1x1x128xi32> to vector<2x256x128xi32>
    %5 = vector.broadcast %3 : vector<2x256x1xi32> to vector<2x256x128xi32>
    %6 = arith.cmpi eq, %4, %5 : vector<2x256x128xi32>
    %cst = arith.constant 0.000000e+00 : f32
    %7 = vector.broadcast %cst : f32 to vector<2x256x128xf32>
    %8 = arith.select %6, %0, %7 : vector<2x256x128xi1>, vector<2x256x128xf32>
    %cst_4 = arith.constant dense<0.000000e+00> : vector<2x256xf32>
    %9 = vector.multi_reduction <add>, %8, %cst_4 [2] : vector<2x256x128xf32> to vector<2x256xf32>
    %cst_5 = arith.constant -3.000000e+01 : f32
    %cst_6 = arith.constant 3.000000e+01 : f32
    %10 = vector.broadcast %cst_5 : f32 to vector<2x256xf32>
    %11 = arith.maximumf %10, %9 : vector<2x256xf32>
    %12 = vector.broadcast %cst_6 : f32 to vector<2x256xf32>
    %13 = arith.minimumf %12, %11 : vector<2x256xf32>
    %c256_i32 = arith.constant 256 : i32
    %14 = arith.muli %arg1, %c256_i32 : i32
    %15 = tpu.iota {dimensions = array<i32: 1>} : vector<1x256xi32>
    %16 = vector.broadcast %14 : i32 to vector<1x256xi32>
    %17 = arith.addi %16, %15 : vector<1x256xi32>
    %c320_i32 = arith.constant 320 : i32
    %18 = vector.broadcast %c320_i32 : i32 to vector<1x256xi32>
    %19 = arith.cmpi slt, %17, %18 : vector<1x256xi32>
    %cst_7 = arith.constant 0.000000e+00 : f32
    %20 = vector.shape_cast %19 : vector<1x256xi1> to vector<1x256xi1>
    %21 = vector.broadcast %20 : vector<1x256xi1> to vector<2x256xi1>
    %22 = vector.broadcast %cst_7 : f32 to vector<2x256xf32>
    %23 = arith.select %21, %13, %22 : vector<2x256xi1>, vector<2x256xf32>
    %c0_8 = arith.constant 0 : index
    %c0_9 = arith.constant 0 : index
    %24 = vector.load %arg4[%c0_8, %c0_9] : memref<2x256xf32, #tpu.memory_space<vmem>>, vector<2x256xf32>
    tpu.vector_store %arg4[%c0_8, %c0_9], %23 {strides = array<i32>} : memref<2x256xf32, #tpu.memory_space<vmem>>, vector<2x256xf32>,
    return
  }
  func.func @transform_0(%arg0: i32, %arg1: i32) -> (i32, i32, i32) {
    %c0_i32 = arith.constant 0 : i32
    %c0_i32_0 = arith.constant 0 : i32
    return %arg0, %arg1, %c0_i32 : i32, i32, i32
  }
  func.func @transform_1(%arg0: i32, %arg1: i32) -> (i32, i32) {
    %c0_i32 = arith.constant 0 : i32
    return %arg0, %arg1 : i32, i32
  }
  func.func @transform_2(%arg0: i32, %arg1: i32) -> (i32, i32) {
    %c0_i32 = arith.constant 0 : i32
    return %arg0, %arg1 : i32, i32
  }
}

</mosaic_0001>

<bundles_post_ra>
// kernel: chain_loss_forward.1
= control target key start
LH: loop header
LB: loop body
LE: loop exit
PB: predicated region body
PF: predicated region fallthrough
CT: control target
= control target key end

     0   :  { %7 = vsyncpa [#allocation3], 0  ;;  %s3648_s0 = inlined_call_operand.hbm [shape: f32[2,320,128], index: 0, kind: input, shape index: {}]   ;;  %s3649_s1 = inlined_call_operand.hbm [shape: s32[2,320], index: 1, kind: input, shape index: {}]   ;;  %s3650_s2 = inlined_call_operand.vmem [shape: f32[2,320], index: 2, kind: output, shape index: {}]  }
   0x1   :  { %9 = vsyncpa [#allocation3 + $0x1], 0 }
   0x2   :  { %10 = vsyncpa [#allocation5], 0 }
   0x3   :  { %12 = vsyncpa [#allocation5 + $0x1], 0  ;;  %s2594_s9 = smov 0   ;;  %s2596_s10 = smov 0  }
   0x4   :  { %s2598_s11 = smov 0   ;;  %s2600_s12 = smov 0  }
   0x5   :  { %s2602_s13 = smov 0   ;;  %s2604_s14 = smov 0  }
   0x6 LB: > { %s2044_s15 = sadd.s32 4294967295, %s2505_s14   ;;  %s27_s16 = sadd.s32 1, %s2501_s13  ;;  %s2505_s14 = sphi %s2604_s14, %s18_s14   ;;  %s2501_s13 = sphi %s2602_s13, %s3668_s13   ;;  %s2497_s12 = sphi %s2600_s12, %s3667_s12   ;;  %s2493_s11 = sphi %s2598_s11, %s3666_s11   ;;  %s2489_s10 = sphi %s2596_s10, %s3665_s10   ;;  %s2485_s9 = sphi %s2594_s9, %s3664_s9  }
   0x7   : > { %p28_p0 = scmp.ge.s32.totalorder %s27_s16, 2  ;;  %s39_s17 = sadd.s32 1, %s2493_s11 }
   0x8   : > { %p46_p1 = scmp.ne.s32.totalorder %s2493_s11, %s2489_s10  ;;  %p47_p2 = scmp.eq.s32.totalorder %s2505_s14, 0 }
   0x9   : > { %s3670_s16 = smov (%p28_p0, %s27_s16), 0  ;;  %p52_p4 = scmp.ne.s32.totalorder %s2489_s10, %s2485_s9 }
   0xa   : > { %p2630_p3 = por %p47_p2, %p46_p1  ;;  %s35_s19 = ssub.s32 %s2501_s13, %s3670_s16 }
   0xb   : > { %p53_p5 = scmp.eq.s32.totalorder %s2044_s15, 0  ;;  %p37_p6 = scmp.eq.s32.totalorder %s35_s19, 0 }
   0xc   : > { %p106_p7 = scmp.eq.s32.totalorder %s2044_s15, 1  ;;  %p2047_p10 = scmp.ge.s32.totalorder %s2505_s14, 2 }
   0xd   : > { %p2637_p8 = por %p53_p5, %p52_p4 }
   0xe   : > { %s2642_s21 = scalar_select %p37_p6, %s2493_s11, %s39_s17  }
   0xf   : > { %p2644_p9 = por %p106_p7, %p46_p1  ;;  %128 = sbr.rel (%p2047_p10) target bundleno = 73 (0x49), region = 16 }
  0x14   : > { %131 = sbr.rel (!%p2630_p3) target bundleno = 42 (0x2a), region = 20 }
  0x19   : > { %s132_s23 = sand.u32 1, %s2493_s11   ;;  %s2049_s24 = sshll.u32 %s2501_s13, 5 }
  0x1a   : > { %s2048_s25 = sshll.u32 %s132_s23, 9  ;;  %s139_s26 = ssub.s32 40, %s2049_s24 }
  0x1b   : > { %p140_p11 = scmp.lt.s32.totalorder %s139_s26, 32  ;;  %s133_s29 = scalar_lea.sflag [#allocation3], %s132_s23 }
  0x1c   : > { %s136_s30 = scalar_lea.vmem [#allocation2], %s2048_s25 }
  0x1d   : > { %s3672_s26 = smov (!%p140_p11, %s139_s26), 32 }
  0x1e   : > { %s2050_s27 = sshll.u32 %s3672_s26, 8 }
  0x1f   : > { %s144_s28 = ssub.s32 8192, %s2050_s27 }
  0x20   : > { %145 = vsyncadd %s133_s29, %s144_s28  ;;  %p2051_p12 = scmp.ne.s32.totalorder %s2050_s27, 0  ;;  %s2167_s3 = sshll.u32 %s2501_s13, 12 }
  0x21   : > { %s150_s6 = scalar_lea.hbm %s3648_s0, %s2167_s3  ;;  %s157_s7 = sld [smem:[#allocation0]]  }
  0x22   : > { %s165_s8 = sshll.u32 %s136_s30, 4  ;;  %s2571_s9 = smov 5120   ;;  %s166_s8 = int_to_ptr.vmem [resolvable:$true] %s165_s8 }
  0x23   : > { %172 = sst [smem:[#allocation8]] %s2571_s9  ;;  %s2572_s15 = smov 4096  }
  0x24   : > { %176 = sst [smem:[#allocation8 + $0x2]] %s3672_s26  ;;  %s2573_s17 = smov 128  }
  0x25   : > { %174 = sst [smem:[#allocation8 + $0x1]] %s2572_s15  ;;  %s2574_s24 = smov 8  }
  0x26   : > { %178 = sst [smem:[#allocation8 + $0x3]] %s2573_s17  ;;  %s2575_s25 = smov 131072  }
  0x27   : > { %s2055_s19 = sshll.u32 %s157_s7, 26  ;;  %180 = sst [smem:[#allocation8 + $0x4]] %s2573_s17 }
  0x28   : > { %s2056_s23 = sadd.s32 134217728, %s2055_s19  ;;  %182 = sst [smem:[#allocation8 + $0x5]] %s2574_s24 }
  0x29   : > { %184 = dma.general (%p2051_p12), %s150_s6, %s2050_s27, %s166_s8, %s133_s29, %s2575_s25, [#allocation8], %s2056_s23, 0  }
  0x2a PF: > { %187 = sbr.rel (!%p2630_p3) target bundleno = 73 (0x49), region = 24  ;;  %s188_s28 = sand.u32 (%p2630_p3), 1, %s2493_s11  }
  0x2b   : > { %s2059_s26 = sshll.u32 (%p2630_p3), %s2501_s13, 1  ;;  %s2058_s30 = sshll.u32 (%p2630_p3), %s188_s28, 2 }
  0x2c   : > { %s194_s3 = ssub.s32 (%p2630_p3), 3, %s2059_s26  ;;  %s2665_s7 = scalar_lea.sflag (%p2630_p3), [#allocation5], %s188_s28 }
  0x2d   : > { %p195_p13 = scmp.lt.s32.totalorder (%p2630_p3), %s194_s3, 2  ;;  %s192_s27 = scalar_lea.vmem (%p2630_p3), [#allocation4], %s2058_s30 }
  0x2f   : > { %s3674_s3 = smov (!%p195_p13, %s194_s3), 2 }
  0x30   : > { %s2662_s4 = sshll.u32 %s3674_s3, 5 }
  0x31   : > { %s199_s5 = ssub.s32 64, %s2662_s4 }
  0x32   : > { %200 = vsyncadd %s2665_s7, %s199_s5  ;;  %p2061_p0 = scmp.ne.s32.totalorder %s2662_s4, 0  ;;  %s2170_s18 = sshll.u32 %s2501_s13, 6 }
  0x33   : > { %s205_s8 = scalar_lea.hbm %s3649_s1, %s2170_s18  ;;  %s208_s9 = sshll.u32 %s192_s27, 4  ;;  %s209_s9 = int_to_ptr.vmem [resolvable:$true] %s208_s9 }
  0x34   : > { %s2361_s15 = scalar_lea.hbm %s205_s8, %s2662_s4  ;;  %s2365_s23 = scalar_lea.hbm %s3649_s1, 96 }
  0x35   : > { %p2362_p1 = scmp.ne.s32.totalorder %s205_s8, %s2361_s15  ;;  %p2367_p4 = scmp.lt.s32.totalorder %s2365_s23, %s2361_s15 }
  0x37   : > { %p2363_p2 = pnand %p2362_p1, %p2061_p0 }
  0x39   : > { %p2364_p3 = pneg %p2363_p2 }
  0x3b   : > { %p2369_p5 = pnand %p2367_p4, %p2364_p3 }
  0x3d   : > { %2372 = shalt.err (!%p2369_p5)
}
  0x3e   : > { %s2373_s24 = scalar_lea.vmem %s209_s9, %s2662_s4  ;;  %s2576_s25 = smov [#allocation4]  }
  0x3f   : > { %p2374_p6 = scmp.ne.s32.totalorder %s209_s9, %s2373_s24  ;;  %s2377_s28 = sshll.u32 %s2576_s25, 4  ;;  %s2378_s28 = int_to_ptr.vmem [resolvable:$false] %s2377_s28 }
  0x40   : > { %s2379_s26 = scalar_lea.vmem %s2378_s28, 128  ;;  %p2380_p11 = scmp.lt.s32.totalorder %s209_s9, %s2378_s28 }
  0x41   : > { %p2375_p7 = pnand %p2374_p6, %p2061_p0  ;;  %p2381_p12 = scmp.lt.s32.totalorder %s2379_s26, %s2373_s24 }
  0x43   : > { %p2376_p10 = pneg %p2375_p7  ;;  %p2382_p13 = por %p2381_p12, %p2380_p11 }
  0x45   : > { %p2383_p1 = pnand %p2382_p13, %p2376_p10 }
  0x47   : > { %2386 = shalt.err (!%p2383_p1)
}
  0x48   : > { %211 = dma.hbm_to_vmem [thread:$0]  (%p2061_p0), %s205_s8, %s2662_s4, %s209_s9, %s2665_s7  }
  0x49 PF: > { %p2065_p2 = scmp.ge.s32.totalorder %s2505_s14, 1  ;;  %p213_p3 = scmp.lt.s32.totalorder %s2505_s14, 3 }
  0x4b   : > { %p214_p4 = pnand %p2065_p2, %p213_p3 }
  0x4c   : > { %s2689_s30 = sand.u32 (!%p214_p4), 1, %s2489_s10  }
  0x4d   : > { %217 = sbr.rel (%p214_p4) target bundleno = 685 (0x2ad), region = 28  ;;  %s2066_s3 = sshll.u32 (!%p214_p4), %s2689_s30, 9 }
  0x4e   : > { %s220_s5 = scalar_lea.sflag (!%p214_p4), [#allocation3], %s2689_s30  ;;  %s2693_s27 = scalar_lea.vmem (!%p214_p4), [#allocation2], %s2066_s3 }
  0x52   : > { %2476 = dma.done.wait (%p2637_p8), %s220_s5, 8192  }
  0x53   : > { %2478 = vsyncadd (%p2637_p8), %s220_s5, 4294959104  ;;  %s2067_s4 = sshll.u32 %s2689_s30, 2  ;;  %s229_s7 = scalar_lea.sflag [#allocation5], %s2689_s30 }
  0x54   : > { %s232_s18 = scalar_lea.vmem [#allocation4], %s2067_s4 }
  0x55   : > { %2480 = dma.done.wait (%p2637_p8), %s229_s7, 64  }
  0x56   : > { %2482 = vsyncadd (%p2637_p8), %s229_s7, 4294967232  ;;  %v338_v0 = vlaneseq  ;;  %v2069_v3 = vld.sshfl [vmem:[%s232_s18] sm:$0x33 pattern:$0x76325410]  ;;  %v275_v35 = vld [vmem:[%s2693_s27 + $0x10] sm:$0xff] }
  0x57   : > { %v347_v5 = vcombine.high %v2069_v3, %v2069_v3  ;;  %v273_v31 = vld [vmem:[%s2693_s27] sm:$0xff]  ;;  %v274_v36 = vld [vmem:[%s2693_s27 + $0x8] sm:$0xff]  ;;  %v276_v41 = vld [vmem:[%s2693_s27 + $0x18] sm:$0xff]  ;;  %s2134_s20 = sshll.u32 %s2497_s12, 8  ;;  %s3215_s29 = scalar_lea.vmem [#allocation6], %s2067_s4  }
  0x58   : > { %v2708_v1 = vshrl.u32 %v338_v0, 7  ;;  %v2731_v28 = vand.u32 127, %v338_v0  ;;  %v277_v42 = vld [vmem:[%s2693_s27 + $0x20] sm:$0xff]  ;;  %v278_v47 = vld [vmem:[%s2693_s27 + $0x28] sm:$0xff]  ;;  %v279_v48 = vld [vmem:[%s2693_s27 + $0x30] sm:$0xff]  ;;  %s2137_s6 = sshll.u32 (%p2644_p9), %s2497_s12, 1 }
  0x59   : > { %v280_v53 = vld [vmem:[%s2693_s27 + $0x38] sm:$0xff]  ;;  %v281_v54 = vld [vmem:[%s2693_s27 + $0x40] sm:$0xff]  ;;  %v282_v59 = vld [vmem:[%s2693_s27 + $0x48] sm:$0xff]  ;;  %s2171_s8 = sshll.u32 (%p2644_p9), %s2497_s12, 2  ;;  %s1448_s9 = ssub.s32 (%p2644_p9), 3, %s2137_s6 }
  0x5a   : > { %v350_v2 = vsub.s32 0, %v2708_v1  ;;  %v484_v7 = vsub.s32 1, %v2708_v1  ;;  %v283_v60 = vld [vmem:[%s2693_s27 + $0x50] sm:$0xff]  ;;  %s3225_s19 = scalar_lea.vmem (%p2644_p9), %s3650_s2, %s2171_s8   ;;  %p1449_p8 = scmp.lt.s32.totalorder (%p2644_p9), %s1448_s9, 2 }
  0x5c   : > { %v351_v4 = vrot.slane %v2069_v3, %v350_v2  ;;  %v418_v6 = vrot.slane %v347_v5, %v350_v2  ;;  %v485_v8 = vrot.slane %v2069_v3, %v484_v7  ;;  %v552_v9 = vrot.slane %v347_v5, %v484_v7  ;;  %v284_v2 = vld [vmem:[%s2693_s27 + $0x58] sm:$0xff]  ;;  %v285_v3 = vld [vmem:[%s2693_s27 + $0x60] sm:$0xff] }
  0x5e   : > { %361 = vbcast.lane.b32.xlu1 %v351_v4, 272  ;;  %353 = vbcast.lane.b32.xlu0 %v351_v4, 256 }
  0x62   : > { %365 = vbcast.lane.b32.xlu1 %v351_v4, 280  ;;  %357 = vbcast.lane.b32.xlu0 %v351_v4, 264 }
  0x66   : > { %373 = vbcast.lane.b32.xlu1 %v351_v4, 296  ;;  %369 = vbcast.lane.b32.xlu0 %v351_v4, 288 }
  0x6a   : > { %381 = vbcast.lane.b32.xlu1 %v351_v4, 312  ;;  %377 = vbcast.lane.b32.xlu0 %v351_v4, 304 }
  0x6e   : > { %389 = vbcast.lane.b32.xlu1 %v351_v4, 328  ;;  %385 = vbcast.lane.b32.xlu0 %v351_v4, 320 }
  0x72   : > { %397 = vbcast.lane.b32.xlu1 %v351_v4, 344  ;;  %393 = vbcast.lane.b32.xlu0 %v351_v4, 336 }
  0x76   : > { %405 = vbcast.lane.b32.xlu1 %v351_v4, 360  ;;  %401 = vbcast.lane.b32.xlu0 %v351_v4, 352 }
  0x7a   : > { %413 = vbcast.lane.b32.xlu1 %v351_v4, 376  ;;  %409 = vbcast.lane.b32.xlu0 %v351_v4, 368 }
  0x7e   : > { %424 = vbcast.lane.b32.xlu1 %v418_v6, 264  ;;  %420 = vbcast.lane.b32.xlu0 %v418_v6, 256 }
  0x82   : > { %432 = vbcast.lane.b32.xlu1 %v418_v6, 280  ;;  %428 = vbcast.lane.b32.xlu0 %v418_v6, 272 }
  0x86   : > { %440 = vbcast.lane.b32.xlu1 %v418_v6, 296  ;;  %436 = vbcast.lane.b32.xlu0 %v418_v6, 288 }
  0x8a   : > { %448 = vbcast.lane.b32.xlu1 %v418_v6, 312  ;;  %444 = vbcast.lane.b32.xlu0 %v418_v6, 304 }
  0x8e   : > { %456 = vbcast.lane.b32.xlu1 %v418_v6, 328  ;;  %452 = vbcast.lane.b32.xlu0 %v418_v6, 320 }
  0x92   : > { %464 = vbcast.lane.b32.xlu1 %v418_v6, 344  ;;  %460 = vbcast.lane.b32.xlu0 %v418_v6, 336 }
  0x96   : > { %472 = vbcast.lane.b32.xlu1 %v418_v6, 360  ;;  %468 = vbcast.lane.b32.xlu0 %v418_v6, 352 }
  0x9a   : > { %480 = vbcast.lane.b32.xlu1 %v418_v6, 376  ;;  %476 = vbcast.lane.b32.xlu0 %v418_v6, 368 }
  0x9e   : > { %491 = vbcast.lane.b32.xlu1 %v485_v8, 264  ;;  %487 = vbcast.lane.b32.xlu0 %v485_v8, 256 }
  0xa2   : > { %499 = vbcast.lane.b32.xlu1 %v485_v8, 280  ;;  %495 = vbcast.lane.b32.xlu0 %v485_v8, 272 }
  0xa6   : > { %507 = vbcast.lane.b32.xlu1 %v485_v8, 296  ;;  %503 = vbcast.lane.b32.xlu0 %v485_v8, 288 }
  0xaa   : > { %515 = vbcast.lane.b32.xlu1 %v485_v8, 312  ;;  %511 = vbcast.lane.b32.xlu0 %v485_v8, 304 }
  0xae   : > { %523 = vbcast.lane.b32.xlu1 %v485_v8, 328  ;;  %519 = vbcast.lane.b32.xlu0 %v485_v8, 320 }
  0xb2   : > { %531 = vbcast.lane.b32.xlu1 %v485_v8, 344  ;;  %527 = vbcast.lane.b32.xlu0 %v485_v8, 336 }
  0xb6   : > { %539 = vbcast.lane.b32.xlu1 %v485_v8, 360  ;;  %535 = vbcast.lane.b32.xlu0 %v485_v8, 352 }
  0xba   : > { %547 = vbcast.lane.b32.xlu1 %v485_v8, 376  ;;  %543 = vbcast.lane.b32.xlu0 %v485_v8, 368  ;;  %v286_v8 = vld [vmem:[%s2693_s27 + $0x68] sm:$0xff] }
  0xbe   : > { %558 = vbcast.lane.b32.xlu1 %v552_v9, 264  ;;  %554 = vbcast.lane.b32.xlu0 %v552_v9, 256 }
  0xc2   : > { %566 = vbcast.lane.b32.xlu1 %v552_v9, 280  ;;  %562 = vbcast.lane.b32.xlu0 %v552_v9, 272 }
  0xc6   : > { %574 = vbcast.lane.b32.xlu1 %v552_v9, 296  ;;  %570 = vbcast.lane.b32.xlu0 %v552_v9, 288 }
  0xca   : > { %582 = vbcast.lane.b32.xlu1 %v552_v9, 312  ;;  %578 = vbcast.lane.b32.xlu0 %v552_v9, 304 }
  0xce   : > { %590 = vbcast.lane.b32.xlu1 %v552_v9, 328  ;;  %586 = vbcast.lane.b32.xlu0 %v552_v9, 320 }
  0xd0   : > { %v362_v10 = vpop.permute.xlu1 %361  ;;  %v354_v11 = vpop.permute.xlu0 %353 }
  0xd1   : > { %vm616_vm0 = vcmp.eq.s32.totalorder %v2731_v28, %v354_v11  ;;  %vm618_vm1 = vcmp.eq.s32.totalorder %v2731_v28, %v362_v10 }
  0xd2   : > { %598 = vbcast.lane.b32.xlu1 %v552_v9, 344  ;;  %594 = vbcast.lane.b32.xlu0 %v552_v9, 336  ;;  %v680_v34 = vsel %vm616_vm0, %v273_v31, 0.0  ;;  %v682_v39 = vsel %vm618_vm1, %v275_v35, 0.0 }
  0xd4   : > { %v366_v12 = vpop.permute.xlu1 %365  ;;  %v358_v13 = vpop.permute.xlu0 %357 }
  0xd5   : > { %vm617_vm2 = vcmp.eq.s32.totalorder %v2731_v28, %v358_v13  ;;  %vm619_vm3 = vcmp.eq.s32.totalorder %v2731_v28, %v366_v12 }
  0xd6   : > { %606 = vbcast.lane.b32.xlu1 %v552_v9, 360  ;;  %602 = vbcast.lane.b32.xlu0 %v552_v9, 352  ;;  %v681_v40 = vsel %vm617_vm2, %v274_v36, 0.0  ;;  %v683_v45 = vsel %vm619_vm3, %v276_v41, 0.0 }
  0xd8   : > { %v374_v14 = vpop.permute.xlu1 %373  ;;  %v370_v15 = vpop.permute.xlu0 %369 }
  0xd9   : > { %vm620_vm4 = vcmp.eq.s32.totalorder %v2731_v28, %v370_v15  ;;  %vm621_vm5 = vcmp.eq.s32.totalorder %v2731_v28, %v374_v14  ;;  %v288_v14 = vld [vmem:[%s2693_s27 + $0x78] sm:$0xff]  ;;  %v289_v15 = vld [vmem:[%s2693_s27 + $0x80] sm:$0xff] }
  0xda   : > { %614 = vbcast.lane.b32.xlu1 %v552_v9, 376  ;;  %610 = vbcast.lane.b32.xlu0 %v552_v9, 368  ;;  %v684_v46 = vsel %vm620_vm4, %v277_v42, 0.0  ;;  %v685_v51 = vsel %vm621_vm5, %v278_v47, 0.0  ;;  %v287_v9 = vld [vmem:[%s2693_s27 + $0x70] sm:$0xff] }
  0xdc   : > { %v382_v16 = vpop.permute.xlu1 %381  ;;  %v378_v17 = vpop.permute.xlu0 %377 }
  0xdd   : > { %vm622_vm6 = vcmp.eq.s32.totalorder %v2731_v28, %v378_v17  ;;  %vm623_vm7 = vcmp.eq.s32.totalorder %v2731_v28, %v382_v16 }
  0xde   : > { %v686_v52 = vsel %vm622_vm6, %v279_v48, 0.0  ;;  %v687_v57 = vsel %vm623_vm7, %v280_v53, 0.0  ;;  %v291_v53 = vld [vmem:[%s2693_s27 + $0x90] sm:$0xff] }
  0xe0   : > { %v2712_v18 = vpop.permute.xlu1 %389  ;;  %v386_v19 = vpop.permute.xlu0 %385 }
  0xe1   : > { %vm624_vm8 = vcmp.eq.s32.totalorder %v2731_v28, %v386_v19  ;;  %vm625_vm9 = vcmp.eq.s32.totalorder %v2731_v28, %v2712_v18 }
  0xe2   : > { %v688_v58 = vsel %vm624_vm8, %v281_v54, 0.0  ;;  %v689_v63 = vsel %vm625_vm9, %v282_v59, 0.0  ;;  %v307_v54 = vld [vmem:[%s2693_s27 + $0x110] sm:$0xff] }
  0xe4   : > { %v2714_v20 = vpop.permute.xlu1 %397  ;;  %v2716_v21 = vpop.permute.xlu0 %393 }
  0xe5   : > { %vm626_vm10 = vcmp.eq.s32.totalorder %v2731_v28, %v2716_v21  ;;  %vm627_vm11 = vcmp.eq.s32.totalorder %v2731_v28, %v2714_v20  ;;  %v290_v20 = vld [vmem:[%s2693_s27 + $0x88] sm:$0xff]  ;;  %v305_v21 = vld [vmem:[%s2693_s27 + $0x100] sm:$0xff] }
  0xe6   : > { %v690_v0 = vsel %vm626_vm10, %v283_v60, 0.0  ;;  %v691_v6 = vsel %vm627_vm11, %v284_v2, 0.0 }
  0xe8   : > { %v2718_v22 = vpop.permute.xlu1 %405  ;;  %v2720_v23 = vpop.permute.xlu0 %401 }
  0xe9   : > { %vm628_vm12 = vcmp.eq.s32.totalorder %v2731_v28, %v2720_v23  ;;  %vm629_vm13 = vcmp.eq.s32.totalorder %v2731_v28, %v2718_v22 }
  0xea   : > { %v692_v7 = vsel %vm628_vm12, %v285_v3, 0.0  ;;  %v693_v12 = vsel %vm629_vm13, %v286_v8, 0.0  ;;  %v309_v8 = vld [vmem:[%s2693_s27 + $0x120] sm:$0xff] }
  0xec   : > { %v2722_v24 = vpop.permute.xlu1 %413  ;;  %v2724_v25 = vpop.permute.xlu0 %409 }
  0xed   : > { %vm630_vm14 = vcmp.eq.s32.totalorder %v2731_v28, %v2724_v25  ;;  %vm631_vm15 = vcmp.eq.s32.totalorder %v2731_v28, %v2722_v24 }
  0xee   : > { %v694_v13 = vsel %vm630_vm14, %v287_v9, 0.0  ;;  %v695_v18 = vsel %vm631_vm15, %v288_v14, 0.0  ;;  %v325_v9 = vld [vmem:[%s2693_s27 + $0x1a0] sm:$0xff] }
  0xf0   : > { %v2726_v26 = vpop.permute.xlu1 %424  ;;  %v2728_v27 = vpop.permute.xlu0 %420 }
  0xf1   : > { %vm632_vm0 = vcmp.eq.s32.totalorder %v2731_v28, %v2728_v27  ;;  %vm633_vm1 = vcmp.eq.s32.totalorder %v2731_v28, %v2726_v26  ;;  %v306_v27 = vld [vmem:[%s2693_s27 + $0x108] sm:$0xff] }
  0xf2   : > { %v696_v19 = vsel %vm632_vm0, %v289_v15, 0.0  ;;  %v697_v24 = vsel %vm633_vm1, %v290_v20, 0.0  ;;  %v326_v15 = vld [vmem:[%s2693_s27 + $0x1a8] sm:$0xff]  ;;  %v311_v20 = vld [vmem:[%s2693_s27 + $0x130] sm:$0xff] }
  0xf4   : > { %v2733_v29 = vpop.permute.xlu1 %432  ;;  %v2735_v30 = vpop.permute.xlu0 %428 }
  0xf5   : > { %vm634_vm7 = vcmp.eq.s32.totalorder %v2731_v28, %v2735_v30  ;;  %vm635_vm9 = vcmp.eq.s32.totalorder %v2731_v28, %v2733_v29  ;;  %v324_v30 = vld [vmem:[%s2693_s27 + $0x198] sm:$0xff]  ;;  %v293_v29 = vld [vmem:[%s2693_s27 + $0xa0] sm:$0xff] }
  0xf6   : > { %v698_v59 = vsel %vm634_vm7, %v291_v53, 0.0 }
  0xf8   : > { %v2739_v32 = vpop.permute.xlu1 %440  ;;  %v2741_v33 = vpop.permute.xlu0 %436 }
  0xf9   : > { %744 = vadd.xlane.f32.xlu0 %v680_v34  ;;  %vm636_vm13 = vcmp.eq.s32.totalorder %v2731_v28, %v2741_v33  ;;  %vm637_vm15 = vcmp.eq.s32.totalorder %v2731_v28, %v2739_v32  ;;  %v295_v32 = vld [vmem:[%s2693_s27 + $0xb0] sm:$0xff] }
  0xfc   : > { %v2747_v37 = vpop.permute.xlu1 %448  ;;  %v2749_v38 = vpop.permute.xlu0 %444 }
  0xfd   : > { %748 = vadd.xlane.f32.xlu0 %v682_v39 }
  0xfe   : > { %746 = vadd.xlane.f32.xlu1 %v681_v40 }
 0x100   : > { %v2755_v43 = vpop.permute.xlu1 %456  ;;  %v2757_v44 = vpop.permute.xlu0 %452 }
 0x101   : > { %750 = vadd.xlane.f32.xlu0 %v683_v45  ;;  %v321_v45 = vld [vmem:[%s2693_s27 + $0x180] sm:$0xff] }
 0x102   : > { %752 = vadd.xlane.f32.xlu1 %v684_v46  ;;  %v322_v46 = vld [vmem:[%s2693_s27 + $0x188] sm:$0xff] }
 0x104   : > { %v2763_v49 = vpop.permute.xlu1 %464  ;;  %v2765_v50 = vpop.permute.xlu0 %460 }
 0x105   : > { %754 = vadd.xlane.f32.xlu0 %v685_v51 }
 0x106   : > { %756 = vadd.xlane.f32.xlu1 %v686_v52 }
 0x108   : > { %v2771_v55 = vpop.permute.xlu1 %472  ;;  %v2773_v56 = vpop.permute.xlu0 %468 }
 0x109   : > { %758 = vadd.xlane.f32.xlu0 %v687_v57 }
 0x10a   : > { %760 = vadd.xlane.f32.xlu1 %v688_v58  ;;  %v323_v58 = vld [vmem:[%s2693_s27 + $0x190] sm:$0xff] }
 0x10c   : > { %v2781_v61 = vpop.permute.xlu1 %480  ;;  %v2783_v62 = vpop.permute.xlu0 %476 }
 0x10d   : > { %762 = vadd.xlane.f32.xlu0 %v689_v63 }
 0x10e   : > { %764 = vadd.xlane.f32.xlu1 %v690_v0  ;;  %v292_v0 = vld [vmem:[%s2693_s27 + $0x98] sm:$0xff] }
 0x10f   : > { %v699_v3 = vsel %vm635_vm9, %v292_v0, 0.0  ;;  %v315_v0 = vld [vmem:[%s2693_s27 + $0x150] sm:$0xff] }
 0x110   : > { %v492_v4 = vpop.permute.xlu1 %491  ;;  %v488_v5 = vpop.permute.xlu0 %487 }
 0x111   : > { %766 = vadd.xlane.f32.xlu0 %v691_v6  ;;  %vm648_vm2 = vcmp.eq.s32.totalorder %v2731_v28, %v488_v5  ;;  %vm649_vm3 = vcmp.eq.s32.totalorder %v2731_v28, %v492_v4  ;;  %v308_v4 = vld [vmem:[%s2693_s27 + $0x118] sm:$0xff] }
 0x112   : > { %768 = vadd.xlane.f32.xlu1 %v692_v7  ;;  %v712_v25 = vsel %vm648_vm2, %v305_v21, 0.0  ;;  %v713_v34 = vsel %vm649_vm3, %v306_v27, 0.0  ;;  %vm638_vm3 = vcmp.eq.s32.totalorder %v2731_v28, %v2749_v38  ;;  %v328_v38 = vld [vmem:[%s2693_s27 + $0x1b8] sm:$0xff] }
 0x114   : > { %v2797_v10 = vpop.permute.xlu1 %499  ;;  %v496_v11 = vpop.permute.xlu0 %495 }
 0x115   : > { %770 = vadd.xlane.f32.xlu0 %v693_v12  ;;  %vm650_vm6 = vcmp.eq.s32.totalorder %v2731_v28, %v496_v11  ;;  %vm651_vm11 = vcmp.eq.s32.totalorder %v2731_v28, %v2797_v10  ;;  %v700_v10 = vsel %vm636_vm13, %v293_v29, 0.0  ;;  %v332_v29 = vld [vmem:[%s2693_s27 + $0x1d8] sm:$0xff] }
 0x116   : > { %772 = vadd.xlane.f32.xlu1 %v694_v13  ;;  %v714_v60 = vsel %vm650_vm6, %v307_v54, 0.0  ;;  %v715_v6 = vsel %vm651_vm11, %v308_v4, 0.0  ;;  %v294_v13 = vld [vmem:[%s2693_s27 + $0xa8] sm:$0xff]  ;;  %v329_v54 = vld [vmem:[%s2693_s27 + $0x1c0] sm:$0xff]  ;;  %v331_v4 = vld [vmem:[%s2693_s27 + $0x1d0] sm:$0xff] }
 0x117   : > { %v701_v33 = vsel %vm637_vm15, %v294_v13, 0.0  ;;  %v302_v13 = vld [vmem:[%s2693_s27 + $0xe8] sm:$0xff] }
 0x118   : > { %v2805_v16 = vpop.permute.xlu1 %507  ;;  %v2807_v17 = vpop.permute.xlu0 %503 }
 0x119   : > { %774 = vadd.xlane.f32.xlu0 %v695_v18  ;;  %vm652_vm12 = vcmp.eq.s32.totalorder %v2731_v28, %v2807_v17  ;;  %vm653_vm1 = vcmp.eq.s32.totalorder %v2731_v28, %v2805_v16  ;;  %v310_v17 = vld [vmem:[%s2693_s27 + $0x128] sm:$0xff] }
 0x11a   : > { %776 = vadd.xlane.f32.xlu1 %v696_v19  ;;  %v716_v11 = vsel %vm652_vm12, %v309_v8, 0.0  ;;  %v717_v19 = vsel %vm653_vm1, %v310_v17, 0.0  ;;  %v334_v17 = vld [vmem:[%s2693_s27 + $0x1e8] sm:$0xff] }
 0x11c   : > { %v2814_v22 = vpop.permute.xlu1 %515  ;;  %v2816_v23 = vpop.permute.xlu0 %511 }
 0x11d   : > { %778 = vadd.xlane.f32.xlu0 %v697_v24  ;;  %vm654_vm2 = vcmp.eq.s32.totalorder %v2731_v28, %v2816_v23  ;;  %v702_v24 = vsel %vm638_vm3, %v295_v32, 0.0  ;;  %v296_v23 = vld [vmem:[%s2693_s27 + $0xb8] sm:$0xff]  ;;  %vm655_vm6 = vcmp.eq.s32.totalorder %v2731_v28, %v2814_v22  ;;  %v297_v22 = vld [vmem:[%s2693_s27 + $0xc0] sm:$0xff] }
 0x11e   : > { %808 = vadd.xlane.f32.xlu1 %v712_v25  ;;  %v718_v21 = vsel %vm654_vm2, %v311_v20, 0.0  ;;  %v327_v25 = vld [vmem:[%s2693_s27 + $0x1b0] sm:$0xff] }
 0x120   : > { %v2820_v31 = vpop.permute.xlu1 %523  ;;  %v2822_v26 = vpop.permute.xlu0 %519 }
 0x121   : > { %810 = vadd.xlane.f32.xlu0 %v713_v34  ;;  %vm656_vm9 = vcmp.eq.s32.totalorder %v2731_v28, %v2822_v26  ;;  %vm657_vm12 = vcmp.eq.s32.totalorder %v2731_v28, %v2820_v31  ;;  %v299_v31 = vld [vmem:[%s2693_s27 + $0xd0] sm:$0xff] }
 0x124   : > { %v2824_v35 = vpop.permute.xlu1 %531  ;;  %v2826_v36 = vpop.permute.xlu0 %527 }
 0x125   : > { %vm658_vm15 = vcmp.eq.s32.totalorder %v2731_v28, %v2826_v36  ;;  %vm659_vm2 = vcmp.eq.s32.totalorder %v2731_v28, %v2824_v35  ;;  %v301_v35 = vld [vmem:[%s2693_s27 + $0xe0] sm:$0xff] }
 0x128   : > { %v2828_v39 = vpop.permute.xlu1 %539  ;;  %v2830_v40 = vpop.permute.xlu0 %535 }
 0x12c   : > { %v2832_v41 = vpop.permute.xlu1 %547  ;;  %v2834_v42 = vpop.permute.xlu0 %543 }
 0x130   : > { %v559_v47 = vpop.permute.xlu1 %558  ;;  %v555_v48 = vpop.permute.xlu0 %554 }
 0x131   : > { %vm665_vm4 = vcmp.eq.s32.totalorder %v2731_v28, %v559_v47  ;;  %vm664_vm5 = vcmp.eq.s32.totalorder %v2731_v28, %v555_v48  ;;  %v313_v48 = vld [vmem:[%s2693_s27 + $0x140] sm:$0xff] }
 0x132   : > { %v728_v51 = vsel %vm664_vm5, %v321_v45, 0.0  ;;  %v729_v52 = vsel %vm665_vm4, %v322_v46, 0.0  ;;  %vm639_vm4 = vcmp.eq.s32.totalorder %v2731_v28, %v2747_v37  ;;  %v312_v46 = vld [vmem:[%s2693_s27 + $0x138] sm:$0xff] }
 0x133   : > { %840 = vadd.xlane.f32.xlu1 %v728_v51  ;;  %842 = vadd.xlane.f32.xlu0 %v729_v52  ;;  %v703_v45 = vsel %vm639_vm4, %v296_v23, 0.0  ;;  %v719_v37 = vsel %vm655_vm6, %v312_v46, 0.0  ;;  %v720_v52 = vsel %vm656_vm9, %v313_v48, 0.0  ;;  %vm644_vm4 = vcmp.eq.s32.totalorder %v2731_v28, %v2773_v56 }
 0x134   : > { %v563_v57 = vpop.permute.xlu0 %562  ;;  %v567_v63 = vpop.permute.xlu1 %566  ;;  %vm645_vm6 = vcmp.eq.s32.totalorder %v2731_v28, %v2771_v55  ;;  %v2955_v46 = vsub.s32 %v2731_v28, %v2708_v1 }
 0x135   : > { %vm666_vm8 = vcmp.eq.s32.totalorder %v2731_v28, %v563_v57  ;;  %vm667_vm10 = vcmp.eq.s32.totalorder %v2731_v28, %v567_v63 }
 0x136   : > { %v730_v2 = vsel %vm666_vm8, %v323_v58, 0.0  ;;  %v731_v5 = vsel %vm667_vm10, %v324_v30, 0.0  ;;  %vm640_vm8 = vcmp.eq.s32.totalorder %v2731_v28, %v2757_v44  ;;  %vm641_vm10 = vcmp.eq.s32.totalorder %v2731_v28, %v2755_v43  ;;  %v298_v44 = vld [vmem:[%s2693_s27 + $0xc8] sm:$0xff] }
 0x137   : > { %780 = vadd.xlane.f32.xlu1 %v698_v59  ;;  %812 = vadd.xlane.f32.xlu0 %v714_v60  ;;  %v704_v53 = vsel %vm640_vm8, %v297_v22, 0.0  ;;  %v705_v58 = vsel %vm641_vm10, %v298_v44, 0.0  ;;  %v314_v59 = vld [vmem:[%s2693_s27 + $0x148] sm:$0xff]  ;;  %v722_v30 = vsel %vm658_vm15, %v315_v0, 0.0  ;;  %vm661_vm8 = vcmp.eq.s32.totalorder %v2731_v28, %v2828_v39  ;;  %v303_v39 = vld [vmem:[%s2693_s27 + $0xf0] sm:$0xff] }
 0x138   : > { %v571_v7 = vpop.permute.xlu0 %570  ;;  %v575_v12 = vpop.permute.xlu1 %574  ;;  %v330_v60 = vld [vmem:[%s2693_s27 + $0x1c8] sm:$0xff]  ;;  %v721_v43 = vsel %vm657_vm12, %v314_v59, 0.0  ;;  %vm646_vm10 = vcmp.eq.s32.totalorder %v2731_v28, %v2783_v62  ;;  %vm647_vm12 = vcmp.eq.s32.totalorder %v2731_v28, %v2781_v61  ;;  %v1086_v61 = vadd.s32 4294967280, %v2731_v28 }
 0x139   : > { %vm668_vm14 = vcmp.eq.s32.totalorder %v2731_v28, %v571_v7  ;;  %vm669_vm0 = vcmp.eq.s32.totalorder %v2731_v28, %v575_v12  ;;  %v316_v7 = vld [vmem:[%s2693_s27 + $0x158] sm:$0xff]  ;;  %v708_v12 = vsel %vm644_vm4, %v301_v35, 0.0  ;;  %vm1112_vm4 = vcmask 392512  }
 0x13a   : > { %v732_v14 = vsel %vm668_vm14, %v325_v9, 0.0  ;;  %v733_v18 = vsel %vm669_vm0, %v326_v15, 0.0  ;;  %vm642_vm14 = vcmp.eq.s32.totalorder %v2731_v28, %v2765_v50  ;;  %vm643_vm0 = vcmp.eq.s32.totalorder %v2731_v28, %v2763_v49  ;;  %v300_v50 = vld [vmem:[%s2693_s27 + $0xd8] sm:$0xff]  ;;  %v317_v9 = vld [vmem:[%s2693_s27 + $0x160] sm:$0xff] }
 0x13b   : > { %844 = vadd.xlane.f32.xlu1 %v730_v2  ;;  %782 = vadd.xlane.f32.xlu0 %v699_v3  ;;  %v706_v3 = vsel %vm642_vm14, %v299_v31, 0.0  ;;  %v723_v49 = vsel %vm659_vm2, %v316_v7, 0.0  ;;  %vm663_vm14 = vcmp.eq.s32.totalorder %v2731_v28, %v2832_v41  ;;  %vm1098_vm2 = vcmask 261312  }
 0x13c   : > { %v579_v16 = vpop.permute.xlu0 %578  ;;  %v583_v27 = vpop.permute.xlu1 %582 }
 0x13d   : > { %vm670_vm5 = vcmp.eq.s32.totalorder %v2731_v28, %v579_v16  ;;  %vm671_vm7 = vcmp.eq.s32.totalorder %v2731_v28, %v583_v27  ;;  %v710_v16 = vsel %vm646_vm10, %v303_v39, 0.0  ;;  %vm1154_vm10 = vcmask 786112  }
 0x13e   : > { %v734_v34 = vsel %vm670_vm5, %v327_v25, 0.0  ;;  %v735_v47 = vsel %vm671_vm7, %v328_v38, 0.0  ;;  %vm660_vm5 = vcmp.eq.s32.totalorder %v2731_v28, %v2830_v40  ;;  %v709_v40 = vsel %vm645_vm6, %v302_v13, 0.0 }
 0x13f   : > { %814 = vadd.xlane.f32.xlu1 %v715_v6  ;;  %846 = vadd.xlane.f32.xlu0 %v731_v5  ;;  %v707_v6 = vsel %vm643_vm0, %v300_v50, 0.0  ;;  %vm1084_vm0 = vcmask 130112   ;;  %vm1126_vm6 = vcmask 523712  }
 0x140   : > { %v587_v51 = vpop.permute.xlu0 %586  ;;  %v591_v57 = vpop.permute.xlu1 %590 }
 0x141   : > { %vm672_vm11 = vcmp.eq.s32.totalorder %v2731_v28, %v587_v51  ;;  %vm673_vm13 = vcmp.eq.s32.totalorder %v2731_v28, %v591_v57  ;;  %v1100_v51 = vadd.s32 4294967264, %v2731_v28 }
 0x142   : > { %v736_v26 = vsel %vm672_vm11, %v329_v54, 0.0  ;;  %v737_v63 = vsel %vm673_vm13, %v330_v60, 0.0  ;;  %vm662_vm11 = vcmp.eq.s32.totalorder %v2731_v28, %v2834_v42  ;;  %v1079_v42 = vadd.s32 4294967288, %v2731_v28 }
 0x143   : > { %784 = vadd.xlane.f32.xlu1 %v700_v10  ;;  %816 = vadd.xlane.f32.xlu0 %v716_v11  ;;  %v724_v11 = vsel %vm660_vm5, %v317_v9, 0.0  ;;  %vm1119_vm5 = vcmask 458112  }
 0x144   : > { %v595_v2 = vpop.permute.xlu0 %594  ;;  %v599_v5 = vpop.permute.xlu1 %598  ;;  %v2958_v38 = vsub.s32 %v1079_v42, %v2708_v1  ;;  %v1156_v42 = vadd.s32 4294967200, %v2731_v28 }
 0x145   : > { %vm674_vm1 = vcmp.eq.s32.totalorder %v2731_v28, %v595_v2  ;;  %vm675_vm3 = vcmp.eq.s32.totalorder %v2731_v28, %v599_v5 }
 0x146   : > { %v738_v36 = vsel %vm674_vm1, %v331_v4, 0.0  ;;  %v739_v8 = vsel %vm675_vm3, %v332_v29, 0.0  ;;  %vm1091_vm1 = vcmask 195712   ;;  %vm1105_vm3 = vcmask 326912  }
 0x147   : > { %848 = vadd.xlane.f32.xlu1 %v732_v14  ;;  %786 = vadd.xlane.f32.xlu0 %v701_v33  ;;  %v333_v14 = vld [vmem:[%s2693_s27 + $0x1e0] sm:$0xff]  ;;  %v318_v33 = vld [vmem:[%s2693_s27 + $0x168] sm:$0xff] }
 0x148   : > { %v603_v10 = vpop.permute.xlu0 %602  ;;  %v607_v56 = vpop.permute.xlu1 %606  ;;  %v725_v55 = vsel %vm661_vm8, %v318_v33, 0.0  ;;  %v1142_v33 = vadd.s32 4294967216, %v2731_v28  ;;  %vm1140_vm8 = vcmask 654912  }
 0x149   : > { %vm676_vm7 = vcmp.eq.s32.totalorder %v2731_v28, %v603_v10  ;;  %vm677_vm9 = vcmp.eq.s32.totalorder %v2731_v28, %v607_v56 }
 0x14a   : > { %v740_v15 = vsel %vm676_vm7, %v333_v14, 0.0  ;;  %v1135_v14 = vadd.s32 4294967224, %v2731_v28  ;;  %vm1133_vm7 = vcmask 589312  }
 0x14b   : > { %818 = vadd.xlane.f32.xlu1 %v717_v19  ;;  %850 = vadd.xlane.f32.xlu0 %v733_v18  ;;  %v741_v18 = vsel %vm677_vm9, %v334_v17, 0.0  ;;  %v319_v19 = vld [vmem:[%s2693_s27 + $0x170] sm:$0xff]  ;;  %vm1147_vm9 = vcmask 720512  }
 0x14c   : > { %v611_v20 = vpop.permute.xlu0 %610  ;;  %v726_v32 = vsel %vm662_vm11, %v319_v19, 0.0  ;;  %v615_v62 = vpop.permute.xlu1 %614  ;;  %vm1161_vm11 = vcmask 851712  }
 0x14d   : > { %vm678_vm13 = vcmp.eq.s32.totalorder %v2731_v28, %v611_v20  ;;  %vm679_vm15 = vcmp.eq.s32.totalorder %v2731_v28, %v615_v62  ;;  %v3009_v62 = vsub.s32 %v1142_v33, %v2708_v1 }
 0x14f   : > { %788 = vadd.xlane.f32.xlu1 %v702_v24  ;;  %820 = vadd.xlane.f32.xlu0 %v718_v21  ;;  %v304_v21 = vld [vmem:[%s2693_s27 + $0xf8] sm:$0xff]  ;;  %v335_v24 = vld [vmem:[%s2693_s27 + $0x1f0] sm:$0xff] }
 0x150   : > { %v711_v25 = vsel %vm647_vm12, %v304_v21, 0.0  ;;  %v742_v23 = vsel %vm678_vm13, %v335_v24, 0.0  ;;  %vm1168_vm12 = vcmask 917312   ;;  %vm1175_vm13 = vcmask 982912  }
 0x153   : > { %852 = vadd.xlane.f32.xlu1 %v734_v34  ;;  %790 = vadd.xlane.f32.xlu0 %v703_v45  ;;  %v320_v34 = vld [vmem:[%s2693_s27 + $0x178] sm:$0xff] }
 0x154   : > { %v336_v45 = vld [vmem:[%s2693_s27 + $0x1f8] sm:$0xff] }
 0x155   : > { %v743_v48 = vsel %vm679_vm15, %v336_v45, 0.0  ;;  %vm1421_vm15 = vcmask 1041409  }
 0x157   : > { %822 = vadd.xlane.f32.xlu1 %v719_v37  ;;  %854 = vadd.xlane.f32.xlu0 %v735_v47  ;;  %v1093_v37 = vadd.s32 4294967272, %v2731_v28  ;;  %v727_v47 = vsel %vm663_vm14, %v320_v34, 0.0  ;;  %vm1182_vm14 = vcmask 1048512  }
 0x159   : > { %v2966_v57 = vsub.s32 %v1093_v37, %v2708_v1 }
 0x15b   : > { %792 = vadd.xlane.f32.xlu1 %v704_v53  ;;  %824 = vadd.xlane.f32.xlu0 %v720_v52  ;;  %v2963_v52 = vsub.s32 %v1086_v61, %v2708_v1 }
 0x15f   : > { %856 = vadd.xlane.f32.xlu1 %v736_v26  ;;  %794 = vadd.xlane.f32.xlu0 %v705_v58  ;;  %v1107_v26 = vadd.s32 4294967256, %v2731_v28 }
 0x161   : > { %v2980_v5 = vsub.s32 %v1107_v26, %v2708_v1 }
 0x163   : > { %826 = vadd.xlane.f32.xlu1 %v721_v43  ;;  %858 = vadd.xlane.f32.xlu0 %v737_v63  ;;  %v2972_v43 = vsub.s32 %v1100_v51, %v2708_v1  ;;  %v1114_v63 = vadd.s32 4294967248, %v2731_v28  ;;  %v1170_v51 = vadd.s32 4294967184, %v2731_v28 }
 0x165   : > { %v2985_v29 = vsub.s32 %v1114_v63, %v2708_v1  ;;  %v1177_v63 = vadd.s32 4294967176, %v2731_v28 }
 0x167   : > { %796 = vadd.xlane.f32.xlu1 %v706_v3  ;;  %828 = vadd.xlane.f32.xlu0 %v722_v30 }
 0x16b   : > { %860 = vadd.xlane.f32.xlu1 %v738_v36  ;;  %798 = vadd.xlane.f32.xlu0 %v707_v6  ;;  %v1121_v36 = vadd.s32 4294967240, %v2731_v28 }
 0x16d   : > { %v2992_v13 = vsub.s32 %v1121_v36, %v2708_v1 }
 0x16f   : > { %830 = vadd.xlane.f32.xlu1 %v723_v49  ;;  %862 = vadd.xlane.f32.xlu0 %v739_v8  ;;  %v1128_v49 = vadd.s32 4294967232, %v2731_v28 }
 0x173   : > { %800 = vadd.xlane.f32.xlu1 %v708_v12  ;;  %832 = vadd.xlane.f32.xlu0 %v724_v11 }
 0x177   : > { %864 = vadd.xlane.f32.xlu1 %v740_v15  ;;  %802 = vadd.xlane.f32.xlu0 %v709_v40  ;;  %v2997_v15 = vsub.s32 %v1128_v49, %v2708_v1 }
 0x17b   : > { %834 = vadd.xlane.f32.xlu1 %v725_v55  ;;  %866 = vadd.xlane.f32.xlu0 %v741_v18 }
 0x17f   : > { %804 = vadd.xlane.f32.xlu1 %v710_v16  ;;  %836 = vadd.xlane.f32.xlu0 %v726_v32  ;;  %v3004_v32 = vsub.s32 %v1135_v14, %v2708_v1  ;;  %v1149_v16 = vadd.s32 4294967208, %v2731_v28 }
 0x181   : > { %v3016_v37 = vsub.s32 %v1149_v16, %v2708_v1 }
 0x182   : > { %v745_v27 = vpop.xlane.xlu0 %744 }
 0x183   : > { %868 = vadd.xlane.f32.xlu1 %v742_v23  ;;  %806 = vadd.xlane.f32.xlu0 %v711_v25  ;;  %v2070_v22 = vclamps-f32 %v745_v27, 30.0 }
 0x185   : > { %v1078_v58 = vrot.slane %v2070_v22, %v2955_v46 }
 0x186   : > { %v749_v41 = vpop.xlane.xlu0 %748 }
 0x187   : > { %v2072_v53 = vclamps-f32 %v749_v41, 30.0  ;;  %838 = vadd.xlane.f32.xlu1 %v727_v47  ;;  %v747_v54 = vpop.xlane.xlu1 %746  ;;  %870 = vadd.xlane.f32.xlu0 %v743_v48  ;;  %v1163_v47 = vadd.s32 4294967192, %v2731_v28  ;;  %v3021_v41 = vsub.s32 %v1156_v42, %v2708_v1 }
 0x188   : > { %v2071_v44 = vclamps-f32 %v747_v54, 30.0 }
 0x189   : > { %v1090_v0 = vrot.slane %v2072_v53, %v2963_v52 }
 0x18a   : > { %v1083_v59 = vrot.slane %v2071_v44, %v2958_v38  ;;  %v751_v60 = vpop.xlane.xlu0 %750 }
 0x18b   : > { %v2073_v31 = vclamps-f32 %v751_v60, 30.0  ;;  %v753_v2 = vpop.xlane.xlu1 %752  ;;  %v3028_v60 = vsub.s32 %v1163_v47, %v2708_v1 }
 0x18c   : > { %v1085_v30 = vsel %vm1084_vm0, %v1083_v59, %v1078_v58  ;;  %v2074_v3 = vclamps-f32 %v753_v2, 30.0  ;;  %v3033_v2 = vsub.s32 %v1170_v51, %v2708_v1 }
 0x18d   : > { %v1092_v4 = vsel %vm1091_vm1, %v1090_v0, %v1085_v30  ;;  %v1097_v50 = vrot.slane %v2073_v31, %v2966_v57 }
 0x18e   : > { %v1104_v6 = vrot.slane %v2074_v3, %v2972_v43  ;;  %v755_v7 = vpop.xlane.xlu0 %754 }
 0x18f   : > { %v1099_v8 = vsel %vm1098_vm2, %v1097_v50, %v1092_v4  ;;  %v2075_v9 = vclamps-f32 %v755_v7, 30.0  ;;  %v757_v35 = vpop.xlane.xlu1 %756  ;;  %v3039_v7 = vsub.s32 %v1177_v63, %v2708_v1 }
 0x190   : > { %v1106_v10 = vsel %vm1105_vm3, %v1104_v6, %v1099_v8  ;;  %v2076_v11 = vclamps-f32 %v757_v35, 30.0 }
 0x191   : > { %v1111_v12 = vrot.slane %v2075_v9, %v2980_v5 }
 0x192   : > { %v1118_v56 = vrot.slane %v2076_v11, %v2985_v29  ;;  %v759_v40 = vpop.xlane.xlu0 %758 }
 0x193   : > { %v1113_v17 = vsel %vm1112_vm4, %v1111_v12, %v1106_v10  ;;  %v2077_v55 = vclamps-f32 %v759_v40, 30.0  ;;  %v761_v18 = vpop.xlane.xlu1 %760 }
 0x194   : > { %v1120_v19 = vsel %vm1119_vm5, %v1118_v56, %v1113_v17  ;;  %v2078_v39 = vclamps-f32 %v761_v18, 30.0 }
 0x195   : > { %v1125_v20 = vrot.slane %v2077_v55, %v2992_v13 }
 0x196   : > { %v1132_v21 = vrot.slane %v2078_v39, %v2997_v15  ;;  %v763_v24 = vpop.xlane.xlu0 %762 }
 0x197   : > { %v1127_v25 = vsel %vm1126_vm6, %v1125_v20, %v1120_v19  ;;  %v2079_v23 = vclamps-f32 %v763_v24, 30.0  ;;  %v765_v27 = vpop.xlane.xlu1 %764 }
 0x198   : > { %v1134_v34 = vsel %vm1133_vm7, %v1132_v21, %v1127_v25  ;;  %v2080_v45 = vclamps-f32 %v765_v27, 30.0 }
 0x199   : > { %v1139_v61 = vrot.slane %v2079_v23, %v3004_v32 }
 0x19a   : > { %v1146_v48 = vrot.slane %v2080_v45, %v3009_v62  ;;  %v767_v22 = vpop.xlane.xlu0 %766 }
 0x19b   : > { %v1141_v53 = vsel %vm1140_vm8, %v1139_v61, %v1134_v34  ;;  %v2081_v54 = vclamps-f32 %v767_v22, 30.0  ;;  %v769_v44 = vpop.xlane.xlu1 %768 }
 0x19c   : > { %v1148_v26 = vsel %vm1147_vm9, %v1146_v48, %v1141_v53  ;;  %v2082_v58 = vclamps-f32 %v769_v44, 30.0 }
 0x19d   : > { %v1153_v59 = vrot.slane %v2081_v54, %v3016_v37 }
 0x19e   : > { %v1160_v0 = vrot.slane %v2082_v58, %v3021_v41  ;;  %v771_v31 = vpop.xlane.xlu0 %770 }
 0x19f   : > { %v1155_v30 = vsel %vm1154_vm10, %v1153_v59, %v1148_v26  ;;  %v2083_v3 = vclamps-f32 %v771_v31, 30.0  ;;  %v773_v4 = vpop.xlane.xlu1 %772 }
 0x1a0   : > { %v1162_v50 = vsel %vm1161_vm11, %v1160_v0, %v1155_v30  ;;  %v2084_v36 = vclamps-f32 %v773_v4, 30.0 }
 0x1a1   : > { %v1167_v6 = vrot.slane %v2083_v3, %v3028_v60 }
 0x1a2   : > { %v1174_v49 = vrot.slane %v2084_v36, %v3033_v2  ;;  %v775_v8 = vpop.xlane.xlu0 %774 }
 0x1a3   : > { %v1169_v9 = vsel %vm1168_vm12, %v1167_v6, %v1162_v50  ;;  %v2085_v35 = vclamps-f32 %v775_v8, 30.0  ;;  %v777_v10 = vpop.xlane.xlu1 %776 }
 0x1a4   : > { %v1176_v11 = vsel %vm1175_vm13, %v1174_v49, %v1169_v9  ;;  %v2086_v14 = vclamps-f32 %v777_v10, 30.0 }
 0x1a5   : > { %v1181_v12 = vrot.slane %v2085_v35, %v3039_v7 }
 0x1a6   : > { %v779_v56 = vpop.xlane.xlu0 %778  ;;  %v1187_v17 = vrot.slane %v2086_v14, %v2955_v46 }
 0x1a7   : > { %v3046_v40 = vsel %vm1182_vm14, %v1181_v12, %v1176_v11  ;;  %v2087_v33 = vclamps-f32 %v779_v56, 30.0  ;;  %v809_v1 = vpop.xlane.xlu1 %808 }
 0x1a8   : > { %v2102_v18 = vclamps-f32 %v809_v1, 30.0 }
 0x1a9   : > { %v1191_v55 = vrot.slane %v2087_v33, %v2958_v38 }
 0x1aa   : > { %v811_v19 = vpop.xlane.xlu0 %810  ;;  %v1266_v16 = vrot.slane %v2102_v18, %v2955_v46 }
 0x1ab   : > { %v1192_v39 = vsel %vm1084_vm0, %v1191_v55, %v1187_v17  ;;  %v2103_v20 = vclamps-f32 %v811_v19, 30.0 }
 0x1ad   : > { %v1270_v21 = vrot.slane %v2103_v20, %v2958_v38 }
 0x1af   : > { %v1271_v24 = vsel %vm1084_vm0, %v1270_v21, %v1266_v16 }
 0x1bc   : > { %v841_v42 = vpop.xlane.xlu1 %840  ;;  %v843_v25 = vpop.xlane.xlu0 %842 }
 0x1bd   : > { %v2118_v23 = vclamps-f32 %v841_v42, 30.0  ;;  %v2119_v27 = vclamps-f32 %v843_v25, 30.0 }
 0x1bf   : > { %v1345_v34 = vrot.slane %v2118_v23, %v2955_v46  ;;  %v1349_v45 = vrot.slane %v2119_v27, %v2958_v38  ;;  %v1002_v23 = vstv %s2134_s20  ;;  %v1001_v27 = vadd.s32 128, %v2731_v28 }
 0x1c0   : > { %v781_v61 = vpop.xlane.xlu1 %780  ;;  %v813_v47 = vpop.xlane.xlu0 %812 }
 0x1c1   : > { %v1350_v48 = vsel %vm1084_vm0, %v1349_v45, %v1345_v34  ;;  %v2088_v22 = vclamps-f32 %v781_v61, 30.0  ;;  %v2104_v51 = vclamps-f32 %v813_v47, 30.0 }
 0x1c3   : > { %v1196_v53 = vrot.slane %v2088_v22, %v2963_v52  ;;  %v1275_v54 = vrot.slane %v2104_v51, %v2963_v52 }
 0x1c4   : > { %v845_v44 = vpop.xlane.xlu1 %844  ;;  %v783_v26 = vpop.xlane.xlu0 %782 }
 0x1c5   : > { %v1197_v58 = vsel %vm1091_vm1, %v1196_v53, %v1192_v39  ;;  %v1276_v59 = vsel %vm1091_vm1, %v1275_v54, %v1271_v24  ;;  %v2089_v63 = vclamps-f32 %v783_v26, 30.0  ;;  %v2120_v19 = vclamps-f32 %v845_v44, 30.0 }
 0x1c7   : > { %v1201_v46 = vrot.slane %v2089_v63, %v2966_v57  ;;  %v1354_v25 = vrot.slane %v2120_v19, %v2963_v52  ;;  %v3103_v52 = vadd.s32 %v1002_v23, %v2731_v28 }
 0x1c8   : > { %v815_v38 = vpop.xlane.xlu1 %814  ;;  %v847_v0 = vpop.xlane.xlu0 %846 }
 0x1c9   : > { %v1202_v31 = vsel %vm1098_vm2, %v1201_v46, %v1197_v58  ;;  %v2105_v39 = vclamps-f32 %v815_v38, 30.0  ;;  %v2121_v20 = vclamps-f32 %v847_v0, 30.0  ;;  %v1355_v26 = vsel %vm1091_vm1, %v1354_v25, %v1350_v48 }
 0x1ca   : > { %v3106_v46 = vadd.s32 %v1002_v23, %v1001_v27  ;;  %vm1005_vm0 = vcmp.lt.s32.totalorder %v3103_v52, 320 }
 0x1cb   : > { %v1280_v34 = vrot.slane %v2105_v39, %v2966_v57  ;;  %v1359_v45 = vrot.slane %v2121_v20, %v2966_v57 }
 0x1cc   : > { %v785_v30 = vpop.xlane.xlu1 %784  ;;  %v817_v3 = vpop.xlane.xlu0 %816  ;;  %vm1006_vm1 = vcmp.lt.s32.totalorder %v3106_v46, 320 }
 0x1cd   : > { %v2090_v24 = vclamps-f32 %v785_v30, 30.0  ;;  %v2106_v42 = vclamps-f32 %v817_v3, 30.0  ;;  %v1281_v57 = vsel %vm1098_vm2, %v1280_v34, %v1276_v59  ;;  %v1360_v38 = vsel %vm1098_vm2, %v1359_v45, %v1355_v26 }
 0x1cf   : > { %v1206_v51 = vrot.slane %v2090_v24, %v2972_v43  ;;  %v1285_v53 = vrot.slane %v2106_v42, %v2972_v43 }
 0x1d0   : > { %v849_v4 = vpop.xlane.xlu1 %848  ;;  %v787_v50 = vpop.xlane.xlu0 %786 }
 0x1d1   : > { %v2122_v61 = vclamps-f32 %v849_v4, 30.0  ;;  %v2091_v54 = vclamps-f32 %v787_v50, 30.0  ;;  %v1207_v28 = vsel %vm1105_vm3, %v1206_v51, %v1202_v31  ;;  %v1286_v50 = vsel %vm1105_vm3, %v1285_v53, %v1281_v57 }
 0x1d3   : > { %v1364_v0 = vrot.slane %v2122_v61, %v2972_v43  ;;  %v1211_v48 = vrot.slane %v2091_v54, %v2980_v5 }
 0x1d4   : > { %v819_v36 = vpop.xlane.xlu1 %818  ;;  %v851_v6 = vpop.xlane.xlu0 %850 }
 0x1d5   : > { %v2107_v44 = vclamps-f32 %v819_v36, 30.0  ;;  %v2123_v58 = vclamps-f32 %v851_v6, 30.0  ;;  %v1365_v20 = vsel %vm1105_vm3, %v1364_v0, %v1360_v38 }
 0x1d7   : > { %v1290_v6 = vrot.slane %v2107_v44, %v2980_v5 }
 0x1d8   : > { %v789_v49 = vpop.xlane.xlu1 %788  ;;  %v821_v8 = vpop.xlane.xlu0 %820 }
 0x1d9   : > { %v2092_v63 = vclamps-f32 %v789_v49, 30.0  ;;  %v2108_v30 = vclamps-f32 %v821_v8, 30.0  ;;  %v1369_v8 = vrot.slane %v2123_v58, %v2980_v5  ;;  %v1212_v5 = vsel %vm1112_vm4, %v1211_v48, %v1207_v28 }
 0x1da   : > { %v1291_v25 = vsel %vm1112_vm4, %v1290_v6, %v1286_v50 }
 0x1db   : > { %v1216_v19 = vrot.slane %v2092_v63, %v2985_v29  ;;  %v1370_v27 = vsel %vm1112_vm4, %v1369_v8, %v1365_v20 }
 0x1dc   : > { %v3063_v9 = vpop.xlane.xlu1 %852  ;;  %v3065_v35 = vpop.xlane.xlu0 %790 }
 0x1dd   : > { %v2124_v36 = vclamps-f32 %v3063_v9, 30.0  ;;  %v2093_v59 = vclamps-f32 %v3065_v35, 30.0  ;;  %v1295_v9 = vrot.slane %v2108_v30, %v2985_v29  ;;  %v1217_v34 = vsel %vm1119_vm5, %v1216_v19, %v1212_v5 }
 0x1df   : > { %v1221_v23 = vrot.slane %v2093_v59, %v2992_v13 }
 0x1e0   : > { %v3067_v10 = vpop.xlane.xlu1 %822  ;;  %v3069_v11 = vpop.xlane.xlu0 %854 }
 0x1e1   : > { %v2109_v49 = vclamps-f32 %v3067_v10, 30.0  ;;  %v2125_v43 = vclamps-f32 %v3069_v11, 30.0  ;;  %v1374_v11 = vrot.slane %v2124_v36, %v2985_v29  ;;  %v1222_v63 = vsel %vm1126_vm6, %v1221_v23, %v1217_v34 }
 0x1e4   : > { %v3071_v12 = vpop.xlane.xlu1 %792  ;;  %v3073_v14 = vpop.xlane.xlu0 %824 }
 0x1e5   : > { %v2094_v31 = vclamps-f32 %v3071_v12, 30.0  ;;  %v2110_v39 = vclamps-f32 %v3073_v14, 30.0 }
 0x1e7   : > { %v1226_v45 = vrot.slane %v2094_v31, %v2997_v15  ;;  %v1305_v29 = vrot.slane %v2110_v39, %v2997_v15 }
 0x1e8   : > { %v3075_v56 = vpop.xlane.xlu1 %856  ;;  %v3077_v33 = vpop.xlane.xlu0 %794 }
 0x1e9   : > { %v2126_v24 = vclamps-f32 %v3075_v56, 30.0  ;;  %v2095_v35 = vclamps-f32 %v3077_v33, 30.0  ;;  %v1300_v56 = vrot.slane %v2109_v49, %v2992_v13  ;;  %v1379_v33 = vrot.slane %v2125_v43, %v2992_v13 }
 0x1ea   : > { %v1375_v13 = vsel %vm1119_vm5, %v1374_v11, %v1370_v27 }
 0x1eb   : > { %v1231_v61 = vrot.slane %v2095_v35, %v3004_v32 }
 0x1ec   : > { %v3079_v1 = vpop.xlane.xlu1 %826  ;;  %v3081_v17 = vpop.xlane.xlu0 %858 }
 0x1ed   : > { %v2111_v12 = vclamps-f32 %v3079_v1, 30.0  ;;  %v2127_v14 = vclamps-f32 %v3081_v17, 30.0  ;;  %v1296_v1 = vsel %vm1119_vm5, %v1295_v9, %v1291_v25  ;;  %v1384_v17 = vrot.slane %v2126_v24, %v2997_v15 }
 0x1ee   : > { %v1301_v57 = vsel %vm1126_vm6, %v1300_v56, %v1296_v1  ;;  %v1380_v15 = vsel %vm1126_vm6, %v1379_v33, %v1375_v13 }
 0x1ef   : > { %v1310_v44 = vrot.slane %v2111_v12, %v3004_v32  ;;  %v1389_v26 = vrot.slane %v2127_v14, %v3004_v32  ;;  %v1306_v0 = vsel %vm1133_vm7, %v1305_v29, %v1301_v57  ;;  %v1385_v32 = vsel %vm1133_vm7, %v1384_v17, %v1380_v15 }
 0x1f0   : > { %v3083_v55 = vpop.xlane.xlu1 %796  ;;  %v3085_v18 = vpop.xlane.xlu0 %828 }
 0x1f1   : > { %v2096_v51 = vclamps-f32 %v3083_v55, 30.0  ;;  %v2112_v58 = vclamps-f32 %v3085_v18, 30.0  ;;  %v1227_v55 = vsel %vm1133_vm7, %v1226_v45, %v1222_v63  ;;  %v1390_v59 = vsel %vm1140_vm8, %v1389_v26, %v1385_v32 }
 0x1f2   : > { %v1232_v18 = vsel %vm1140_vm8, %v1231_v61, %v1227_v55 }
 0x1f3   : > { %v1236_v50 = vrot.slane %v2096_v51, %v3009_v62  ;;  %v1315_v49 = vrot.slane %v2112_v58, %v3009_v62 }
 0x1f4   : > { %v3087_v16 = vpop.xlane.xlu1 %860  ;;  %v3089_v21 = vpop.xlane.xlu0 %798 }
 0x1f5   : > { %v2128_v38 = vclamps-f32 %v3087_v16, 30.0  ;;  %v2097_v30 = vclamps-f32 %v3089_v21, 30.0  ;;  %v1311_v16 = vsel %vm1140_vm8, %v1310_v44, %v1306_v0  ;;  %v1237_v9 = vsel %vm1147_vm9, %v1236_v50, %v1232_v18 }
 0x1f8   : > { %v3096_v47 = vpop.xlane.xlu1 %830  ;;  %v3098_v22 = vpop.xlane.xlu0 %862 }
 0x1f9   : > { %v2113_v28 = vclamps-f32 %v3096_v47, 30.0  ;;  %v2129_v48 = vclamps-f32 %v3098_v22, 30.0  ;;  %v1394_v47 = vrot.slane %v2128_v38, %v3009_v62  ;;  %v1241_v22 = vrot.slane %v2097_v30, %v3016_v37 }
 0x1fb   : > { %v1320_v31 = vrot.slane %v2113_v28, %v3016_v37  ;;  %v1399_v24 = vrot.slane %v2129_v48, %v3016_v37  ;;  %v1395_v12 = vsel %vm1147_vm9, %v1394_v47, %v1390_v59  ;;  %v1242_v37 = vsel %vm1154_vm10, %v1241_v22, %v1237_v9 }
 0x1fc   : > { %v3111_v3 = vpop.xlane.xlu1 %800  ;;  %v3113_v4 = vpop.xlane.xlu0 %832 }
 0x1fd   : > { %v2098_v21 = vclamps-f32 %v3111_v3, 30.0  ;;  %v2114_v43 = vclamps-f32 %v3113_v4, 30.0  ;;  %v1316_v4 = vsel %vm1147_vm9, %v1315_v49, %v1311_v16  ;;  %v1400_v34 = vsel %vm1154_vm10, %v1399_v24, %v1395_v12 }
 0x1fe   : > { %v1321_v56 = vsel %vm1154_vm10, %v1320_v31, %v1316_v4 }
 0x1ff   : > { %v1325_v14 = vrot.slane %v2114_v43, %v3021_v41 }
 0x200   : > { %v3131_v42 = vpop.xlane.xlu1 %864  ;;  %v3133_v10 = vpop.xlane.xlu0 %802 }
 0x201   : > { %v2130_v8 = vclamps-f32 %v3131_v42, 30.0  ;;  %v2099_v19 = vclamps-f32 %v3133_v10, 30.0  ;;  %v1246_v42 = vrot.slane %v2098_v21, %v3021_v41  ;;  %v1326_v13 = vsel %vm1161_vm11, %v1325_v14, %v1321_v56 }
 0x203   : > { %v1404_v25 = vrot.slane %v2130_v8, %v3021_v41  ;;  %v1251_v23 = vrot.slane %v2099_v19, %v3028_v60  ;;  %v1247_v61 = vsel %vm1161_vm11, %v1246_v42, %v1242_v37 }
 0x204   : > { %v835_v53 = vpop.xlane.xlu1 %834  ;;  %v867_v54 = vpop.xlane.xlu0 %866 }
 0x205   : > { %v2115_v39 = vclamps-f32 %v835_v53, 30.0  ;;  %v2131_v20 = vclamps-f32 %v867_v54, 30.0  ;;  %v1252_v44 = vsel %vm1168_vm12, %v1251_v23, %v1247_v61 }
 0x207   : > { %v1330_v33 = vrot.slane %v2115_v39, %v3028_v60  ;;  %v1409_v27 = vrot.slane %v2131_v20, %v3028_v60  ;;  %v1405_v60 = vsel %vm1161_vm11, %v1404_v25, %v1400_v34 }
 0x208   : > { %v805_v36 = vpop.xlane.xlu1 %804  ;;  %v837_v6 = vpop.xlane.xlu0 %836 }
 0x209   : > { %v2100_v3 = vclamps-f32 %v805_v36, 30.0  ;;  %v2116_v35 = vclamps-f32 %v837_v6, 30.0  ;;  %v1331_v26 = vsel %vm1168_vm12, %v1330_v33, %v1326_v13 }
 0x20b   : > { %v1256_v45 = vrot.slane %v2100_v3, %v3033_v2  ;;  %v1335_v29 = vrot.slane %v2116_v35, %v3033_v2 }
 0x20c   : > { %v869_v62 = vpop.xlane.xlu1 %868  ;;  %v807_v5 = vpop.xlane.xlu0 %806 }
 0x20d   : > { %v2132_v10 = vclamps-f32 %v869_v62, 30.0  ;;  %v2101_v11 = vclamps-f32 %v807_v5, 30.0  ;;  %v1257_v57 = vsel %vm1175_vm13, %v1256_v45, %v1252_v44  ;;  %v1336_v15 = vsel %vm1175_vm13, %v1335_v29, %v1331_v26 }
 0x20f   : > { %v1414_v1 = vrot.slane %v2132_v10, %v3033_v2  ;;  %v1261_v51 = vrot.slane %v2101_v11, %v3039_v7  ;;  %v1410_v2 = vsel %vm1168_vm12, %v1409_v27, %v1405_v60 }
 0x210   : > { %v839_v17 = vpop.xlane.xlu1 %838  ;;  %v871_v41 = vpop.xlane.xlu0 %870 }
 0x211   : > { %v2117_v53 = vclamps-f32 %v839_v17, 30.0  ;;  %v2133_v54 = vclamps-f32 %v871_v41, 30.0  ;;  %v1415_v38 = vsel %vm1175_vm13, %v1414_v1, %v1410_v2  ;;  %v1262_v55 = vsel %vm1182_vm14, %v1261_v51, %v1257_v57 }
 0x213   : > { %v1340_v58 = vrot.slane %v2117_v53, %v3039_v7  ;;  %v1419_v63 = vrot.slane %v2133_v54, %v3039_v7 }
 0x215   : > { %v1341_v52 = vsel %vm1182_vm14, %v1340_v58, %v1336_v15  ;;  %v1420_v0 = vsel %vm1182_vm14, %v1419_v63, %v1415_v38 }
 0x216   : > { %v1422_v30 = vsel %vm1421_vm15, %v1341_v52, %v3046_v40  ;;  %v1423_v28 = vsel %vm1421_vm15, %v1420_v0, %v1262_v55  ;;  %1446 = sbr.rel (!%p2644_p9) target bundleno = 685 (0x2ad), region = 40 }
 0x217   : > { %v1426_v7 = vsel %vm1005_vm0, %v1422_v30, 0.0  ;;  %v1427_v32 = vsel %vm1006_vm1, %v1423_v28, 0.0 }
 0x218   : > { %v1430_v18 = vcombine.low %v1426_v7, %v1427_v32 }
 0x21a   : > { %2135 = vst.sshfl [vmem:[%s3215_s29] sm:$0x33 pattern:$0x76325410] %v1430_v18 }
 0x21b   : > { %s3676_s9 = smov (!%p1449_p8, %s1448_s9), 2 }
 0x21c   : > { %s2138_s23 = sshll.u32 %s3676_s9, 5  ;;  %s3227_s24 = sshll.u32 %s3676_s9, 1 }
 0x21d   : > { %p2142_p0 = scmp.eq.s32.totalorder %s2138_s23, 0 }
 0x21e   : > { %p1461_p5 = scmp.lt.u32.totalorder (!%p2142_p0), %s3227_s24, 8 }
 0x21f   : > { %1460 = sbr.rel (%p2142_p0) target bundleno = 685 (0x2ad), region = 44 }
 0x224   : > { %1464 = sbr.rel (%p1461_p5) target bundleno = 676 (0x2a4), region = 48  ;;  %s3231_s22 = sand.u32 (!%p1461_p5), 7, %s3227_s24  }
 0x225   : > { %p1481_p9 = scmp.eq.s32.totalorder (!%p1461_p5), %s3231_s22, 0  ;;  %p2143_p6 = scmp.ne.s32.totalorder (!%p1461_p5), %s3231_s22, 0 }
 0x229   : > { %1484 = sbr.rel (%p2143_p6) target bundleno = 612 (0x264), region = 63  ;;  %s1485_s12 = sshrl.u32 (!%p2143_p6), %s3227_s24, 3 }
 0x22a   : > { %s3238_s25 = sshrl.u32 (!%p2143_p6), %s1485_s12, 6 }
 0x22b   : > { %p2144_p7 = scmp.le.s32.totalorder (!%p2143_p6), %s3238_s25, 0 }
 0x22e   : > { %1952 = sbr.rel (%p2144_p7) target bundleno = 596 (0x254), region = 164  ;;  %s3654_s28 = smov (!%p2144_p7), %s3225_s19 }
 0x22f   : > { %s3655_s26 = smov (!%p2144_p7), %s3215_s29  ;;  %s3247_s30 = smov (!%p2144_p7), 0  }
 0x230   : > { %s3249_s3 = smov (!%p2144_p7), 0  }
 0x233 LB: >> { %v1498_v40 = vld [vmem:[%s2513_s26] sm:$0xff]  ;;  %v1500_v46 = vld [vmem:[%s2513_s26 + $0x8] sm:$0xff]  ;;  %v1502_v50 = vld [vmem:[%s2513_s26 + $0x10] sm:$0xff]  ;;  %s1626_s5 = sadd.s32 1, %s2517_s30  ;;  %s1492_s3 = sadd.s32 1, %s2521_s3   ;;  %s2521_s3 = sphi %s3249_s3, %s1492_s3   ;;  %s2517_s30 = sphi %s3247_s30, %s3658_s30   ;;  %s2513_s26 = sphi %s3655_s26, %s3657_s26   ;;  %s2509_s28 = sphi %s3654_s28, %s3656_s28  }
 0x234   : >> { %1499 = vst [vmem:[%s2509_s28] sm:$0xff] %v1498_v40  ;;  %1501 = vst [vmem:[%s2509_s28 + $0x8] sm:$0xff] %v1500_v46  ;;  %v1504_v48 = vld [vmem:[%s2513_s26 + $0x18] sm:$0xff]  ;;  %v1506_v36 = vld [vmem:[%s2513_s26 + $0x20] sm:$0xff]  ;;  %p1627_p10 = scmp.ge.s32.totalorder %s1626_s5, %s3238_s25  ;;  %p1491_p11 = scmp.ge.s32.totalorder %s1492_s3, %s3238_s25 }
 0x235   : >> { %1503 = vst [vmem:[%s2509_s28 + $0x10] sm:$0xff] %v1502_v50  ;;  %v1508_v6 = vld [vmem:[%s2513_s26 + $0x28] sm:$0xff]  ;;  %1505 = vst [vmem:[%s2509_s28 + $0x18] sm:$0xff] %v1504_v48  ;;  %v1510_v16 = vld [vmem:[%s2513_s26 + $0x30] sm:$0xff] }
 0x236   : >> { %1507 = vst [vmem:[%s2509_s28 + $0x20] sm:$0xff] %v1506_v36  ;;  %1509 = vst [vmem:[%s2509_s28 + $0x28] sm:$0xff] %v1508_v6  ;;  %v1512_v59 = vld [vmem:[%s2513_s26 + $0x38] sm:$0xff]  ;;  %v1514_v49 = vld [vmem:[%s2513_s26 + $0x40] sm:$0xff]  ;;  %s3678_s5 = smov (%p1627_p10, %s1626_s5), 0 }
 0x237   : >> { %1511 = vst [vmem:[%s2509_s28 + $0x30] sm:$0xff] %v1510_v16  ;;  %1513 = vst [vmem:[%s2509_s28 + $0x38] sm:$0xff] %v1512_v59  ;;  %v1516_v21 = vld [vmem:[%s2513_s26 + $0x48] sm:$0xff]  ;;  %v1518_v47 = vld [vmem:[%s2513_s26 + $0x50] sm:$0xff]  ;;  %s2145_s27 = sshll.u32 %s3678_s5, 9  ;;  %s3658_s30 = smov %s3678_s5 }
 0x238   : >> { %1515 = vst [vmem:[%s2509_s28 + $0x40] sm:$0xff] %v1514_v49  ;;  %v1520_v43 = vld [vmem:[%s2513_s26 + $0x58] sm:$0xff]  ;;  %1517 = vst [vmem:[%s2509_s28 + $0x48] sm:$0xff] %v1516_v21  ;;  %v1522_v8 = vld [vmem:[%s2513_s26 + $0x60] sm:$0xff]  ;;  %s3305_s4 = scalar_lea.vmem %s3215_s29, %s2145_s27 [#allocation6]   ;;  %s3308_s7 = scalar_lea.vmem %s3225_s19, %s2145_s27  }
 0x239   : >> { %1519 = vst [vmem:[%s2509_s28 + $0x50] sm:$0xff] %v1518_v47  ;;  %1521 = vst [vmem:[%s2509_s28 + $0x58] sm:$0xff] %v1520_v43  ;;  %v1524_v19 = vld [vmem:[%s2513_s26 + $0x68] sm:$0xff]  ;;  %v1526_v22 = vld [vmem:[%s2513_s26 + $0x70] sm:$0xff] }
 0x23a   : >> { %1523 = vst [vmem:[%s2509_s28 + $0x60] sm:$0xff] %v1522_v8  ;;  %1525 = vst [vmem:[%s2509_s28 + $0x68] sm:$0xff] %v1524_v19  ;;  %v1528_v31 = vld [vmem:[%s2513_s26 + $0x78] sm:$0xff]  ;;  %v1530_v39 = vld [vmem:[%s2513_s26 + $0x80] sm:$0xff] }
 0x23b   : >> { %1527 = vst [vmem:[%s2509_s28 + $0x70] sm:$0xff] %v1526_v22  ;;  %v1532_v20 = vld [vmem:[%s2513_s26 + $0x88] sm:$0xff]  ;;  %1529 = vst [vmem:[%s2509_s28 + $0x78] sm:$0xff] %v1528_v31  ;;  %v1534_v9 = vld [vmem:[%s2513_s26 + $0x90] sm:$0xff] }
 0x23c   : >> { %1531 = vst [vmem:[%s2509_s28 + $0x80] sm:$0xff] %v1530_v39  ;;  %1533 = vst [vmem:[%s2509_s28 + $0x88] sm:$0xff] %v1532_v20  ;;  %v1536_v24 = vld [vmem:[%s2513_s26 + $0x98] sm:$0xff]  ;;  %v1538_v3 = vld [vmem:[%s2513_s26 + $0xa0] sm:$0xff] }
 0x23d   : >> { %1535 = vst [vmem:[%s2509_s28 + $0x90] sm:$0xff] %v1534_v9  ;;  %1537 = vst [vmem:[%s2509_s28 + $0x98] sm:$0xff] %v1536_v24  ;;  %v1540_v35 = vld [vmem:[%s2513_s26 + $0xa8] sm:$0xff]  ;;  %v1542_v62 = vld [vmem:[%s2513_s26 + $0xb0] sm:$0xff] }
 0x23e   : >> { %1539 = vst [vmem:[%s2509_s28 + $0xa0] sm:$0xff] %v1538_v3  ;;  %v1544_v5 = vld [vmem:[%s2513_s26 + $0xb8] sm:$0xff]  ;;  %1541 = vst [vmem:[%s2509_s28 + $0xa8] sm:$0xff] %v1540_v35  ;;  %v1546_v4 = vld [vmem:[%s2513_s26 + $0xc0] sm:$0xff] }
 0x23f   : >> { %1543 = vst [vmem:[%s2509_s28 + $0xb0] sm:$0xff] %v1542_v62  ;;  %1545 = vst [vmem:[%s2509_s28 + $0xb8] sm:$0xff] %v1544_v5  ;;  %v1548_v42 = vld [vmem:[%s2513_s26 + $0xc8] sm:$0xff]  ;;  %v1550_v10 = vld [vmem:[%s2513_s26 + $0xd0] sm:$0xff] }
 0x240   : >> { %1547 = vst [vmem:[%s2509_s28 + $0xc0] sm:$0xff] %v1546_v4  ;;  %1549 = vst [vmem:[%s2509_s28 + $0xc8] sm:$0xff] %v1548_v42  ;;  %v1552_v11 = vld [vmem:[%s2513_s26 + $0xd8] sm:$0xff]  ;;  %v1554_v12 = vld [vmem:[%s2513_s26 + $0xe0] sm:$0xff] }
 0x241   : >> { %1551 = vst [vmem:[%s2509_s28 + $0xd0] sm:$0xff] %v1550_v10  ;;  %v1556_v14 = vld [vmem:[%s2513_s26 + $0xe8] sm:$0xff]  ;;  %1553 = vst [vmem:[%s2509_s28 + $0xd8] sm:$0xff] %v1552_v11  ;;  %v1558_v25 = vld [vmem:[%s2513_s26 + $0xf0] sm:$0xff] }
 0x242   : >> { %1555 = vst [vmem:[%s2509_s28 + $0xe0] sm:$0xff] %v1554_v12  ;;  %1557 = vst [vmem:[%s2509_s28 + $0xe8] sm:$0xff] %v1556_v14  ;;  %v1560_v23 = vld [vmem:[%s2513_s26 + $0xf8] sm:$0xff]  ;;  %v1562_v37 = vld [vmem:[%s2513_s26 + $0x100] sm:$0xff] }
 0x243   : >> { %1559 = vst [vmem:[%s2509_s28 + $0xf0] sm:$0xff] %v1558_v25  ;;  %1561 = vst [vmem:[%s2509_s28 + $0xf8] sm:$0xff] %v1560_v23  ;;  %v1564_v56 = vld [vmem:[%s2513_s26 + $0x108] sm:$0xff]  ;;  %v1566_v33 = vld [vmem:[%s2513_s26 + $0x110] sm:$0xff] }
 0x244   : >> { %1563 = vst [vmem:[%s2509_s28 + $0x100] sm:$0xff] %v1562_v37  ;;  %v1568_v27 = vld [vmem:[%s2513_s26 + $0x118] sm:$0xff]  ;;  %1565 = vst [vmem:[%s2509_s28 + $0x108] sm:$0xff] %v1564_v56  ;;  %v1570_v34 = vld [vmem:[%s2513_s26 + $0x120] sm:$0xff] }
 0x245   : >> { %1567 = vst [vmem:[%s2509_s28 + $0x110] sm:$0xff] %v1566_v33  ;;  %1569 = vst [vmem:[%s2509_s28 + $0x118] sm:$0xff] %v1568_v27  ;;  %v1572_v45 = vld [vmem:[%s2513_s26 + $0x128] sm:$0xff]  ;;  %v1574_v29 = vld [vmem:[%s2513_s26 + $0x130] sm:$0xff] }
 0x246   : >> { %1571 = vst [vmem:[%s2509_s28 + $0x120] sm:$0xff] %v1570_v34  ;;  %1573 = vst [vmem:[%s2509_s28 + $0x128] sm:$0xff] %v1572_v45  ;;  %v1576_v1 = vld [vmem:[%s2513_s26 + $0x138] sm:$0xff]  ;;  %v1578_v17 = vld [vmem:[%s2513_s26 + $0x140] sm:$0xff] }
 0x247   : >> { %1575 = vst [vmem:[%s2509_s28 + $0x130] sm:$0xff] %v1574_v29  ;;  %v1580_v41 = vld [vmem:[%s2513_s26 + $0x148] sm:$0xff]  ;;  %1577 = vst [vmem:[%s2509_s28 + $0x138] sm:$0xff] %v1576_v1  ;;  %v1582_v61 = vld [vmem:[%s2513_s26 + $0x150] sm:$0xff] }
 0x248   : >> { %1579 = vst [vmem:[%s2509_s28 + $0x140] sm:$0xff] %v1578_v17  ;;  %1581 = vst [vmem:[%s2509_s28 + $0x148] sm:$0xff] %v1580_v41  ;;  %v1584_v51 = vld [vmem:[%s2513_s26 + $0x158] sm:$0xff]  ;;  %v1586_v53 = vld [vmem:[%s2513_s26 + $0x160] sm:$0xff] }
 0x249   : >> { %1583 = vst [vmem:[%s2509_s28 + $0x150] sm:$0xff] %v1582_v61  ;;  %1585 = vst [vmem:[%s2509_s28 + $0x158] sm:$0xff] %v1584_v51  ;;  %v1588_v54 = vld [vmem:[%s2513_s26 + $0x168] sm:$0xff]  ;;  %v1590_v13 = vld [vmem:[%s2513_s26 + $0x170] sm:$0xff] }
 0x24a   : >> { %1587 = vst [vmem:[%s2509_s28 + $0x160] sm:$0xff] %v1586_v53  ;;  %v1592_v60 = vld [vmem:[%s2513_s26 + $0x178] sm:$0xff]  ;;  %1589 = vst [vmem:[%s2509_s28 + $0x168] sm:$0xff] %v1588_v54  ;;  %v1594_v44 = vld [vmem:[%s2513_s26 + $0x180] sm:$0xff] }
 0x24b   : >> { %1591 = vst [vmem:[%s2509_s28 + $0x170] sm:$0xff] %v1590_v13  ;;  %1593 = vst [vmem:[%s2509_s28 + $0x178] sm:$0xff] %v1592_v60  ;;  %v1596_v26 = vld [vmem:[%s2513_s26 + $0x188] sm:$0xff]  ;;  %v1598_v2 = vld [vmem:[%s2513_s26 + $0x190] sm:$0xff] }
 0x24c   : >> { %1595 = vst [vmem:[%s2509_s28 + $0x180] sm:$0xff] %v1594_v44  ;;  %1597 = vst [vmem:[%s2509_s28 + $0x188] sm:$0xff] %v1596_v26  ;;  %v1600_v58 = vld [vmem:[%s2513_s26 + $0x198] sm:$0xff]  ;;  %v1602_v63 = vld [vmem:[%s2513_s26 + $0x1a0] sm:$0xff] }
 0x24d   : >> { %1599 = vst [vmem:[%s2509_s28 + $0x190] sm:$0xff] %v1598_v2  ;;  %v1604_v57 = vld [vmem:[%s2513_s26 + $0x1a8] sm:$0xff]  ;;  %1601 = vst [vmem:[%s2509_s28 + $0x198] sm:$0xff] %v1600_v58  ;;  %v1606_v15 = vld [vmem:[%s2513_s26 + $0x1b0] sm:$0xff] }
 0x24e   : >> { %1603 = vst [vmem:[%s2509_s28 + $0x1a0] sm:$0xff] %v1602_v63  ;;  %1605 = vst [vmem:[%s2509_s28 + $0x1a8] sm:$0xff] %v1604_v57  ;;  %v1608_v38 = vld [vmem:[%s2513_s26 + $0x1b8] sm:$0xff]  ;;  %v1610_v55 = vld [vmem:[%s2513_s26 + $0x1c0] sm:$0xff] }
 0x24f   : >> { %1607 = vst [vmem:[%s2509_s28 + $0x1b0] sm:$0xff] %v1606_v15  ;;  %1609 = vst [vmem:[%s2509_s28 + $0x1b8] sm:$0xff] %v1608_v38  ;;  %v1612_v52 = vld [vmem:[%s2513_s26 + $0x1c8] sm:$0xff]  ;;  %v1614_v0 = vld [vmem:[%s2513_s26 + $0x1d0] sm:$0xff]  ;;  %1494 = sbr.rel (!%p1491_p11) target bundleno = 563 (0x233), region = 170 }
 0x250   : >> { %1611 = vst [vmem:[%s2509_s28 + $0x1c0] sm:$0xff] %v1610_v55  ;;  %v1616_v30 = vld [vmem:[%s2513_s26 + $0x1d8] sm:$0xff]  ;;  %1613 = vst [vmem:[%s2509_s28 + $0x1c8] sm:$0xff] %v1612_v52  ;;  %v1618_v28 = vld [vmem:[%s2513_s26 + $0x1e0] sm:$0xff] }
 0x251   : >> { %1615 = vst [vmem:[%s2509_s28 + $0x1d0] sm:$0xff] %v1614_v0  ;;  %1617 = vst [vmem:[%s2509_s28 + $0x1d8] sm:$0xff] %v1616_v30  ;;  %v1620_v7 = vld [vmem:[%s2513_s26 + $0x1e8] sm:$0xff]  ;;  %v1622_v32 = vld [vmem:[%s2513_s26 + $0x1f0] sm:$0xff] }
 0x252   : >> { %1619 = vst [vmem:[%s2509_s28 + $0x1e0] sm:$0xff] %v1618_v28  ;;  %1621 = vst [vmem:[%s2509_s28 + $0x1e8] sm:$0xff] %v1620_v7  ;;  %v1624_v18 = vld [vmem:[%s2513_s26 + $0x1f8] sm:$0xff]  ;;  %s3657_s26 = smov %s3305_s4 }
 0x253   : >> { %1623 = vst [vmem:[%s2509_s28 + $0x1f0] sm:$0xff] %v1622_v32  ;;  %1625 = vst [vmem:[%s2509_s28 + $0x1f8] sm:$0xff] %v1624_v18  ;;  %s3656_s28 = smov %s3308_s7 }
 0x254 PF: > { %s3414_s18 = sand.u32 63, %s1485_s12   ;;  %s2172_s20 = sshll.u32 %s3238_s25, 13 }
 0x255   : > { %s1637_s6 = sshra.s32 %s2172_s20, 4  ;;  %p2150_p12 = scmp.le.s32.totalorder %s3414_s18, 0 }
 0x256   : > { %s1638_s8 = scalar_lea.vmem %s3215_s29, %s1637_s6 [#allocation6]   ;;  %s1641_s9 = scalar_lea.vmem %s3225_s19, %s1637_s6  }
 0x257   : > { %1966 = sbr.rel (%p2150_p12) target bundleno = 612 (0x264), region = 175  ;;  %s2523_s15 = smov (!%p2150_p12), %s1641_s9  }
 0x258   : > { %s2527_s17 = smov (!%p2150_p12), %s1638_s8   ;;  %s2531_s23 = smov (!%p2150_p12), 0  }
 0x259   : > { %s2535_s3 = smov (!%p2150_p12), 0  }
 0x25c LB: >> { %v1653_v40 = vld [vmem:[%s2529_s17] sm:$0xff]  ;;  %s1655_s12 = sadd.s32 1, %s2533_s23  ;;  %s1647_s3 = sadd.s32 1, %s2537_s3   ;;  %s2537_s3 = sphi %s2535_s3, %s1647_s3   ;;  %s2533_s23 = sphi %s2531_s23, %s2532_s23   ;;  %s2529_s17 = sphi %s2527_s17, %s1660_s17   ;;  %s2525_s15 = sphi %s2523_s15, %s1661_s15  }
 0x25d   : >> { %1654 = vst [vmem:[%s2525_s15] sm:$0xff] %v1653_v40  ;;  %p1656_p13 = scmp.ge.s32.totalorder %s1655_s12, %s3414_s18  ;;  %p1646_p1 = scmp.ge.s32.totalorder %s1647_s3, %s3414_s18 }
 0x25f   : >> { %s3680_s12 = smov (%p1656_p13, %s1655_s12), 0  ;;  %1649 = sbr.rel (!%p1646_p1) target bundleno = 604 (0x25c), region = 181 }
 0x260   : >> { %s2151_s25 = sshll.u32 %s3680_s12, 3  ;;  %s2532_s23 = smov %s3680_s12  }
 0x261   : >> { %s1660_s17 = scalar_lea.vmem %s1638_s8, %s2151_s25 [#allocation6]   ;;  %s1661_s15 = scalar_lea.vmem %s1641_s9, %s2151_s25  }
 0x264 PF: > { %1664 = sbr.rel (%p1481_p9) target bundleno = 676 (0x2a4), region = 81  ;;  %s3426_s28 = ssub.s32 (!%p1481_p9), %s3227_s24, %s3231_s22 }
 0x265   : > { %s1670_s26 = sshrl.u32 (!%p1481_p9), %s3227_s24, 3  ;;  %s1667_s30 = scalar_lea.vmem (!%p1481_p9), %s3215_s29, %s3426_s28 [#allocation6] }
 0x266   : > { %s1669_s5 = scalar_lea.vmem (!%p1481_p9), %s3225_s19, %s3426_s28  ;;  %s3435_s27 = sshrl.u32 (!%p1481_p9), %s1670_s26, 6 }
 0x267   : > { %p2153_p2 = scmp.le.s32.totalorder (!%p1481_p9), %s3435_s27, 0 }
 0x269   : > { %1980 = sbr.rel (%p2153_p2) target bundleno = 655 (0x28f), region = 186  ;;  %s3659_s4 = smov (!%p2153_p2), %s3225_s19 }
 0x26a   : > { %s3660_s7 = smov (!%p2153_p2), %s3215_s29  ;;  %s3444_s18 = smov (!%p2153_p2), 0  }
 0x26b   : > { %s3446_s20 = smov (!%p2153_p2), 0  }
 0x26e LB: >> { %v1683_v46 = vld [vmem:[%s2545_s7] sm:$0xff]  ;;  %v1685_v50 = vld [vmem:[%s2545_s7 + $0x8] sm:$0xff]  ;;  %v1687_v48 = vld [vmem:[%s2545_s7 + $0x10] sm:$0xff]  ;;  %s1811_s6 = sadd.s32 1, %s2549_s18  ;;  %s1677_s20 = sadd.s32 1, %s2553_s20   ;;  %s2553_s20 = sphi %s3446_s20, %s1677_s20   ;;  %s2549_s18 = sphi %s3444_s18, %s3663_s18   ;;  %s2545_s7 = sphi %s3660_s7, %s3662_s7   ;;  %s2541_s4 = sphi %s3659_s4, %s3661_s4  }
 0x26f   : >> { %1684 = vst [vmem:[%s2541_s4] sm:$0xff] %v1683_v46  ;;  %1686 = vst [vmem:[%s2541_s4 + $0x8] sm:$0xff] %v1685_v50  ;;  %v1689_v36 = vld [vmem:[%s2545_s7 + $0x18] sm:$0xff]  ;;  %v1691_v6 = vld [vmem:[%s2545_s7 + $0x20] sm:$0xff]  ;;  %p1812_p3 = scmp.ge.s32.totalorder %s1811_s6, %s3435_s27  ;;  %p1676_p4 = scmp.ge.s32.totalorder %s1677_s20, %s3435_s27 }
 0x270   : >> { %1688 = vst [vmem:[%s2541_s4 + $0x10] sm:$0xff] %v1687_v48  ;;  %v1693_v16 = vld [vmem:[%s2545_s7 + $0x28] sm:$0xff]  ;;  %1690 = vst [vmem:[%s2541_s4 + $0x18] sm:$0xff] %v1689_v36  ;;  %v1695_v59 = vld [vmem:[%s2545_s7 + $0x30] sm:$0xff] }
 0x271   : >> { %1692 = vst [vmem:[%s2541_s4 + $0x20] sm:$0xff] %v1691_v6  ;;  %1694 = vst [vmem:[%s2541_s4 + $0x28] sm:$0xff] %v1693_v16  ;;  %v1697_v49 = vld [vmem:[%s2545_s7 + $0x38] sm:$0xff]  ;;  %v1699_v21 = vld [vmem:[%s2545_s7 + $0x40] sm:$0xff]  ;;  %s3682_s6 = smov (%p1812_p3, %s1811_s6), 0 }
 0x272   : >> { %1696 = vst [vmem:[%s2541_s4 + $0x30] sm:$0xff] %v1695_v59  ;;  %1698 = vst [vmem:[%s2541_s4 + $0x38] sm:$0xff] %v1697_v49  ;;  %v1701_v47 = vld [vmem:[%s2545_s7 + $0x48] sm:$0xff]  ;;  %v1703_v43 = vld [vmem:[%s2545_s7 + $0x50] sm:$0xff]  ;;  %s2154_s8 = sshll.u32 %s3682_s6, 9  ;;  %s3663_s18 = smov %s3682_s6 }
 0x273   : >> { %1700 = vst [vmem:[%s2541_s4 + $0x40] sm:$0xff] %v1699_v21  ;;  %v1705_v8 = vld [vmem:[%s2545_s7 + $0x58] sm:$0xff]  ;;  %1702 = vst [vmem:[%s2541_s4 + $0x48] sm:$0xff] %v1701_v47  ;;  %v1707_v19 = vld [vmem:[%s2545_s7 + $0x60] sm:$0xff]  ;;  %s3502_s9 = scalar_lea.vmem %s3215_s29, %s2154_s8 [#allocation6]   ;;  %s3505_s15 = scalar_lea.vmem %s3225_s19, %s2154_s8  }
 0x274   : >> { %1704 = vst [vmem:[%s2541_s4 + $0x50] sm:$0xff] %v1703_v43  ;;  %1706 = vst [vmem:[%s2541_s4 + $0x58] sm:$0xff] %v1705_v8  ;;  %v1709_v22 = vld [vmem:[%s2545_s7 + $0x68] sm:$0xff]  ;;  %v1711_v31 = vld [vmem:[%s2545_s7 + $0x70] sm:$0xff] }
 0x275   : >> { %1708 = vst [vmem:[%s2541_s4 + $0x60] sm:$0xff] %v1707_v19  ;;  %1710 = vst [vmem:[%s2541_s4 + $0x68] sm:$0xff] %v1709_v22  ;;  %v1713_v39 = vld [vmem:[%s2545_s7 + $0x78] sm:$0xff]  ;;  %v1715_v20 = vld [vmem:[%s2545_s7 + $0x80] sm:$0xff] }
 0x276   : >> { %1712 = vst [vmem:[%s2541_s4 + $0x70] sm:$0xff] %v1711_v31  ;;  %v1717_v9 = vld [vmem:[%s2545_s7 + $0x88] sm:$0xff]  ;;  %1714 = vst [vmem:[%s2541_s4 + $0x78] sm:$0xff] %v1713_v39  ;;  %v1719_v24 = vld [vmem:[%s2545_s7 + $0x90] sm:$0xff] }
 0x277   : >> { %1716 = vst [vmem:[%s2541_s4 + $0x80] sm:$0xff] %v1715_v20  ;;  %1718 = vst [vmem:[%s2541_s4 + $0x88] sm:$0xff] %v1717_v9  ;;  %v1721_v3 = vld [vmem:[%s2545_s7 + $0x98] sm:$0xff]  ;;  %v1723_v35 = vld [vmem:[%s2545_s7 + $0xa0] sm:$0xff] }
 0x278   : >> { %1720 = vst [vmem:[%s2541_s4 + $0x90] sm:$0xff] %v1719_v24  ;;  %1722 = vst [vmem:[%s2541_s4 + $0x98] sm:$0xff] %v1721_v3  ;;  %v1725_v62 = vld [vmem:[%s2545_s7 + $0xa8] sm:$0xff]  ;;  %v1727_v5 = vld [vmem:[%s2545_s7 + $0xb0] sm:$0xff] }
 0x279   : >> { %1724 = vst [vmem:[%s2541_s4 + $0xa0] sm:$0xff] %v1723_v35  ;;  %v1729_v4 = vld [vmem:[%s2545_s7 + $0xb8] sm:$0xff]  ;;  %1726 = vst [vmem:[%s2541_s4 + $0xa8] sm:$0xff] %v1725_v62  ;;  %v1731_v42 = vld [vmem:[%s2545_s7 + $0xc0] sm:$0xff] }
 0x27a   : >> { %1728 = vst [vmem:[%s2541_s4 + $0xb0] sm:$0xff] %v1727_v5  ;;  %1730 = vst [vmem:[%s2541_s4 + $0xb8] sm:$0xff] %v1729_v4  ;;  %v1733_v10 = vld [vmem:[%s2545_s7 + $0xc8] sm:$0xff]  ;;  %v1735_v11 = vld [vmem:[%s2545_s7 + $0xd0] sm:$0xff] }
 0x27b   : >> { %1732 = vst [vmem:[%s2541_s4 + $0xc0] sm:$0xff] %v1731_v42  ;;  %1734 = vst [vmem:[%s2541_s4 + $0xc8] sm:$0xff] %v1733_v10  ;;  %v1737_v12 = vld [vmem:[%s2545_s7 + $0xd8] sm:$0xff]  ;;  %v1739_v14 = vld [vmem:[%s2545_s7 + $0xe0] sm:$0xff] }
 0x27c   : >> { %1736 = vst [vmem:[%s2541_s4 + $0xd0] sm:$0xff] %v1735_v11  ;;  %v1741_v25 = vld [vmem:[%s2545_s7 + $0xe8] sm:$0xff]  ;;  %1738 = vst [vmem:[%s2541_s4 + $0xd8] sm:$0xff] %v1737_v12  ;;  %v1743_v23 = vld [vmem:[%s2545_s7 + $0xf0] sm:$0xff] }
 0x27d   : >> { %1740 = vst [vmem:[%s2541_s4 + $0xe0] sm:$0xff] %v1739_v14  ;;  %1742 = vst [vmem:[%s2541_s4 + $0xe8] sm:$0xff] %v1741_v25  ;;  %v1745_v37 = vld [vmem:[%s2545_s7 + $0xf8] sm:$0xff]  ;;  %v1747_v56 = vld [vmem:[%s2545_s7 + $0x100] sm:$0xff] }
 0x27e   : >> { %1744 = vst [vmem:[%s2541_s4 + $0xf0] sm:$0xff] %v1743_v23  ;;  %1746 = vst [vmem:[%s2541_s4 + $0xf8] sm:$0xff] %v1745_v37  ;;  %v1749_v33 = vld [vmem:[%s2545_s7 + $0x108] sm:$0xff]  ;;  %v1751_v27 = vld [vmem:[%s2545_s7 + $0x110] sm:$0xff] }
 0x27f   : >> { %1748 = vst [vmem:[%s2541_s4 + $0x100] sm:$0xff] %v1747_v56  ;;  %v1753_v34 = vld [vmem:[%s2545_s7 + $0x118] sm:$0xff]  ;;  %1750 = vst [vmem:[%s2541_s4 + $0x108] sm:$0xff] %v1749_v33  ;;  %v1755_v45 = vld [vmem:[%s2545_s7 + $0x120] sm:$0xff] }
 0x280   : >> { %1752 = vst [vmem:[%s2541_s4 + $0x110] sm:$0xff] %v1751_v27  ;;  %1754 = vst [vmem:[%s2541_s4 + $0x118] sm:$0xff] %v1753_v34  ;;  %v1757_v29 = vld [vmem:[%s2545_s7 + $0x128] sm:$0xff]  ;;  %v1759_v1 = vld [vmem:[%s2545_s7 + $0x130] sm:$0xff] }
 0x281   : >> { %1756 = vst [vmem:[%s2541_s4 + $0x120] sm:$0xff] %v1755_v45  ;;  %1758 = vst [vmem:[%s2541_s4 + $0x128] sm:$0xff] %v1757_v29  ;;  %v1761_v17 = vld [vmem:[%s2545_s7 + $0x138] sm:$0xff]  ;;  %v1763_v41 = vld [vmem:[%s2545_s7 + $0x140] sm:$0xff] }
 0x282   : >> { %1760 = vst [vmem:[%s2541_s4 + $0x130] sm:$0xff] %v1759_v1  ;;  %v1765_v61 = vld [vmem:[%s2545_s7 + $0x148] sm:$0xff]  ;;  %1762 = vst [vmem:[%s2541_s4 + $0x138] sm:$0xff] %v1761_v17  ;;  %v1767_v51 = vld [vmem:[%s2545_s7 + $0x150] sm:$0xff] }
 0x283   : >> { %1764 = vst [vmem:[%s2541_s4 + $0x140] sm:$0xff] %v1763_v41  ;;  %1766 = vst [vmem:[%s2541_s4 + $0x148] sm:$0xff] %v1765_v61  ;;  %v1769_v53 = vld [vmem:[%s2545_s7 + $0x158] sm:$0xff]  ;;  %v1771_v54 = vld [vmem:[%s2545_s7 + $0x160] sm:$0xff] }
 0x284   : >> { %1768 = vst [vmem:[%s2541_s4 + $0x150] sm:$0xff] %v1767_v51  ;;  %1770 = vst [vmem:[%s2541_s4 + $0x158] sm:$0xff] %v1769_v53  ;;  %v1773_v13 = vld [vmem:[%s2545_s7 + $0x168] sm:$0xff]  ;;  %v1775_v60 = vld [vmem:[%s2545_s7 + $0x170] sm:$0xff] }
 0x285   : >> { %1772 = vst [vmem:[%s2541_s4 + $0x160] sm:$0xff] %v1771_v54  ;;  %v1777_v44 = vld [vmem:[%s2545_s7 + $0x178] sm:$0xff]  ;;  %1774 = vst [vmem:[%s2541_s4 + $0x168] sm:$0xff] %v1773_v13  ;;  %v1779_v26 = vld [vmem:[%s2545_s7 + $0x180] sm:$0xff] }
 0x286   : >> { %1776 = vst [vmem:[%s2541_s4 + $0x170] sm:$0xff] %v1775_v60  ;;  %1778 = vst [vmem:[%s2541_s4 + $0x178] sm:$0xff] %v1777_v44  ;;  %v1781_v2 = vld [vmem:[%s2545_s7 + $0x188] sm:$0xff]  ;;  %v1783_v58 = vld [vmem:[%s2545_s7 + $0x190] sm:$0xff] }
 0x287   : >> { %1780 = vst [vmem:[%s2541_s4 + $0x180] sm:$0xff] %v1779_v26  ;;  %1782 = vst [vmem:[%s2541_s4 + $0x188] sm:$0xff] %v1781_v2  ;;  %v1785_v63 = vld [vmem:[%s2545_s7 + $0x198] sm:$0xff]  ;;  %v1787_v57 = vld [vmem:[%s2545_s7 + $0x1a0] sm:$0xff] }
 0x288   : >> { %1784 = vst [vmem:[%s2541_s4 + $0x190] sm:$0xff] %v1783_v58  ;;  %v1789_v15 = vld [vmem:[%s2545_s7 + $0x1a8] sm:$0xff]  ;;  %1786 = vst [vmem:[%s2541_s4 + $0x198] sm:$0xff] %v1785_v63  ;;  %v1791_v38 = vld [vmem:[%s2545_s7 + $0x1b0] sm:$0xff] }
 0x289   : >> { %1788 = vst [vmem:[%s2541_s4 + $0x1a0] sm:$0xff] %v1787_v57  ;;  %1790 = vst [vmem:[%s2541_s4 + $0x1a8] sm:$0xff] %v1789_v15  ;;  %v1793_v55 = vld [vmem:[%s2545_s7 + $0x1b8] sm:$0xff]  ;;  %v1795_v52 = vld [vmem:[%s2545_s7 + $0x1c0] sm:$0xff] }
 0x28a   : >> { %1792 = vst [vmem:[%s2541_s4 + $0x1b0] sm:$0xff] %v1791_v38  ;;  %1794 = vst [vmem:[%s2541_s4 + $0x1b8] sm:$0xff] %v1793_v55  ;;  %v1797_v0 = vld [vmem:[%s2545_s7 + $0x1c8] sm:$0xff]  ;;  %v1799_v30 = vld [vmem:[%s2545_s7 + $0x1d0] sm:$0xff]  ;;  %1679 = sbr.rel (!%p1676_p4) target bundleno = 622 (0x26e), region = 192 }
 0x28b   : >> { %1796 = vst [vmem:[%s2541_s4 + $0x1c0] sm:$0xff] %v1795_v52  ;;  %v1801_v28 = vld [vmem:[%s2545_s7 + $0x1d8] sm:$0xff]  ;;  %1798 = vst [vmem:[%s2541_s4 + $0x1c8] sm:$0xff] %v1797_v0  ;;  %v1803_v7 = vld [vmem:[%s2545_s7 + $0x1e0] sm:$0xff] }
 0x28c   : >> { %1800 = vst [vmem:[%s2541_s4 + $0x1d0] sm:$0xff] %v1799_v30  ;;  %1802 = vst [vmem:[%s2541_s4 + $0x1d8] sm:$0xff] %v1801_v28  ;;  %v1805_v32 = vld [vmem:[%s2545_s7 + $0x1e8] sm:$0xff]  ;;  %v1807_v18 = vld [vmem:[%s2545_s7 + $0x1f0] sm:$0xff] }
 0x28d   : >> { %1804 = vst [vmem:[%s2541_s4 + $0x1e0] sm:$0xff] %v1803_v7  ;;  %1806 = vst [vmem:[%s2541_s4 + $0x1e8] sm:$0xff] %v1805_v32  ;;  %v1809_v40 = vld [vmem:[%s2545_s7 + $0x1f8] sm:$0xff]  ;;  %s3662_s7 = smov %s3502_s9 }
 0x28e   : >> { %1808 = vst [vmem:[%s2541_s4 + $0x1f0] sm:$0xff] %v1807_v18  ;;  %1810 = vst [vmem:[%s2541_s4 + $0x1f8] sm:$0xff] %v1809_v40  ;;  %s3661_s4 = smov %s3505_s15 }
 0x28f PF: > { %s3611_s17 = sand.u32 63, %s1670_s26   ;;  %s2174_s23 = sshll.u32 %s3435_s27, 13 }
 0x290   : > { %s1822_s3 = sshra.s32 %s2174_s23, 4  ;;  %p2159_p8 = scmp.le.s32.totalorder %s3611_s17, 0 }
 0x291   : > { %s1823_s12 = scalar_lea.vmem %s3215_s29, %s1822_s3 [#allocation6]   ;;  %s1826_s25 = scalar_lea.vmem %s3225_s19, %s1822_s3  }
 0x292   : > { %1994 = sbr.rel (%p2159_p8) target bundleno = 671 (0x29f), region = 197  ;;  %s2555_s8 = smov (!%p2159_p8), %s1826_s25  }
 0x293   : > { %s2559_s6 = smov (!%p2159_p8), %s1823_s12   ;;  %s2563_s9 = smov (!%p2159_p8), 0  }
 0x294   : > { %s2567_s20 = smov (!%p2159_p8), 0  }
 0x297 LB: >> { %v1838_v46 = vld [vmem:[%s2561_s6] sm:$0xff]  ;;  %s1840_s26 = sadd.s32 1, %s2565_s9  ;;  %s1832_s20 = sadd.s32 1, %s2569_s20   ;;  %s2569_s20 = sphi %s2567_s20, %s1832_s20   ;;  %s2565_s9 = sphi %s2563_s9, %s2564_s9   ;;  %s2561_s6 = sphi %s2559_s6, %s1845_s6   ;;  %s2557_s8 = sphi %s2555_s8, %s1846_s8  }
 0x298   : >> { %1839 = vst [vmem:[%s2557_s8] sm:$0xff] %v1838_v46  ;;  %p1841_p0 = scmp.ge.s32.totalorder %s1840_s26, %s3611_s17  ;;  %p1831_p5 = scmp.ge.s32.totalorder %s1832_s20, %s3611_s17 }
 0x29a   : >> { %s3684_s26 = smov (%p1841_p0, %s1840_s26), 0  ;;  %1834 = sbr.rel (!%p1831_p5) target bundleno = 663 (0x297), region = 203 }
 0x29b   : >> { %s2160_s27 = sshll.u32 %s3684_s26, 3  ;;  %s2564_s9 = smov %s3684_s26  }
 0x29c   : >> { %s1845_s6 = scalar_lea.vmem %s1823_s12, %s2160_s27 [#allocation6]   ;;  %s1846_s8 = scalar_lea.vmem %s1826_s25, %s2160_s27  }
 0x29f PF: > { %s2577_s4 = smov 1  }
 0x2a0   : > { %s1847_s7 = sshll.u32 %s2577_s4, %s3231_s22 }
 0x2a1   : > { %s2162_s18 = sadd.s32 4294967295, %s1847_s7 }
 0x2a2   : > { %v1857_v50 = vld [vmem:[%s1667_s30] sm:%s2162_s18] }
 0x2a3   : > { %1858 = vst [vmem:[%s1669_s5] sm:%s2162_s18] %v1857_v50 }
 0x2a4 PF: > { %p2163_p9 = scmp.ge.u32.totalorder %s3227_s24, 8 }
 0x2a5   : > { %s2578_s15 = smov (!%p2163_p9), 1  }
 0x2a6   : > { %1467 = sbr.rel (%p2163_p9) target bundleno = 685 (0x2ad), region = 52  ;;  %s1468_s17 = sshll.u32 (!%p2163_p9), %s2578_s15, %s3227_s24 }
 0x2a7   : > { %s2164_s23 = sadd.s32 (!%p2163_p9), 4294967295, %s1468_s17 }
 0x2ab   : > { %v1478_v48 = vld [vmem:[%s3215_s29] sm:%s2164_s23] }
 0x2ac   : > { %1479 = vst [vmem:[%s3225_s19] sm:%s2164_s23] %v1478_v48 }
 0x2ad PF: > { %s18_s14 = sadd.s32 1, %s2505_s14   ;;  %s3664_s9 = smov %s2489_s10 }
 0x2ae   : > { %p15_p6 = scmp.ge.s32.totalorder %s18_s14, 4   ;;  %s3665_s10 = smov %s2493_s11 }
 0x2af   : > { %s3666_s11 = smov %s2642_s21  ;;  %s3667_s12 = smov %s2501_s13 }
 0x2b0   : > { %s3668_s13 = smov %s3670_s16  ;;  %17 = sbr.rel (!%p15_p6) target bundleno = 6 (0x6), region = 214 }
 0x2b5   :  { %1872 = vsyncpa [#allocation3], 1 }
 0x2b6   :  { %1874 = vsyncpa [#allocation3 + $0x1], 1 }
 0x2b7   :  { %1875 = vsyncpa [#allocation5], 1 }
 0x2b8   :  { %1877 = vsyncpa [#allocation5 + $0x1], 1 }

</bundles_post_ra>
